<compile_context>
chip_gen: v5e
topology: v5e:2x2
jax: 0.10.0
libtpu: 0.0.40
codegen_flags: <defaults>
</compile_context>

<pallas_src>
import functools
import math

import jax
import jax.numpy as jnp
from jax import lax
from jax.experimental import pallas as pl
from jax.experimental.pallas import tpu as pltpu


# ----------------------------------------------------------------------------
# Tile selection
# ----------------------------------------------------------------------------
def _choose_tiles(B, Ca, P, S, k_eff, vmem_budget=8 * 1024 * 1024, max_bt=8):
    """Pick (batch_tile, point_tile).

    point_tile must be a multiple of 128 that divides P (otherwise the whole P
    axis is taken in a single tile); batch_tile divides B and is capped so the
    per-grid-step working set stays well inside the scoped VMEM budget."""
    if P % 128 == 0:
        # cap so a few live (pt, S) f32/int32 slabs stay well inside VMEM
        cap = max(128, (vmem_budget // 2) // max(1, 4 * S * 4))
        cap = max(128, (cap // 128) * 128)
        target = min(P, 2048, cap)
        pt = 128
        cand = 128
        while cand <= target:
            if P % cand == 0:
                pt = cand
            cand += 128
    else:
        pt = P  # cannot tile cleanly; take the full axis (block == full dim)

    def step_bytes(bt):
        io = 2 * bt * (Ca * pt + Ca * S + k_eff * S) * 4   # double-buffered blocks
        scratch = bt * k_eff * S * 4                       # running top-k keys
        tmp = 4 * pt * S * 4                               # d2/keys/masks (1 batch live)
        return io + scratch + tmp

    bt = 1
    for cand in range(1, min(B, max_bt) + 1):
        if B % cand == 0 and step_bytes(cand) <= vmem_budget:
            bt = cand
    return bt, pt


# ----------------------------------------------------------------------------
# Pallas kernel: packed-key streaming top-k over P tiles
# ----------------------------------------------------------------------------
def _make_knn_kernel(*, k_eff, ib, bt):
    imask = (1 << ib) - 1              # low ib bits hold (imask - point_index)
    maxtb = 0x7FFFFFFF >> ib           # max truncated-distance field

    def kernel(xf_ref, sf_ref, idx_ref, run_ref):
        # xf_ref : (bt, Ca, Pt)  augmented reference points (this P tile)
        # sf_ref : (bt, Ca, S)   augmented query points (resident across P tiles)
        # idx_ref: (bt, k_eff, S) int32 output, row j = j-th nearest index
        # run_ref: (bt, k_eff, S) int32 scratch, running best packed keys
        pi = pl.program_id(1)

        @pl.when(pi == 0)
        def _init():
            run_ref[...] = jnp.full(run_ref.shape, -1, dtype=jnp.int32)

        pt = xf_ref.shape[2]
        s = sf_ref.shape[2]
        p_off = pi * pt

        for b in range(bt):                                   # static unroll (bt <= 8)
            xfb = xf_ref[b]                                   # (Ca, Pt)
            sfb = sf_ref[b]                                   # (Ca, S)
            # d2[p, q] = sum_c xfb[c, p] * sfb[c, q] = ||x_p - s_q||^2  (MXU)
            d2 = lax.dot_general(xfb, sfb, (((0,), (0,)), ((), ())),
                                 preferred_element_type=jnp.float32)  # (Pt, S)
            d2 = jnp.maximum(d2, 0.0)                         # clamp FP cancellation
            bits = pltpu.bitcast(d2, jnp.int32)               # monotone for d2 >= 0
            inv = maxtb - (bits >> ib)                        # larger == closer
            gidx = lax.broadcasted_iota(jnp.int32, (pt, s), 0) + p_off
            # packed key: distance (high bits) | reversed global index (low bits).
            # Keys are unique per query column -> smaller index wins exact ties.
            keys = (inv << ib) | (imask - gidx)               # (Pt, S), always >= 0

            run = run_ref[b]                                  # (k_eff, S) prior best
            for j in range(k_eff):
                m = jnp.maximum(
                    jnp.max(keys, axis=0, keepdims=True),     # this tile
                    jnp.max(run, axis=0, keepdims=True))      # previous tiles
                row = m[0]                                    # (S,)
                run_ref[b, j, :] = row                        # streaming top-k state
                idx_ref[b, j, :] = imask - (row & imask)      # decode point index
                # exclude the (unique) winner; masked entries become -1 (< any key)
                keys = jnp.where(keys < m, keys, jnp.int32(-1))
                run = jnp.where(run < m, run, jnp.int32(-1))

    return kernel


def knn_pallas(xf, sf, k_eff):
    """xf: (B, Cf, P), sf: (B, Cf, S) -> int32 (B, k_eff, S).

    Row j holds, for every query point, the index of its j-th nearest reference
    point (nearest first) — same layout as the PyTorch knn() output."""
    B, Cf, P = xf.shape
    _, _, S = sf.shape
    if k_eff > P:
        raise ValueError(f"k*dilation={k_eff} exceeds number of points P={P}")

    xf = xf.astype(jnp.float32)
    sf = sf.astype(jnp.float32)

    # Fold both squared-norm terms into the matmul via two augmented channels:
    #   d2[p, q] = sum_c xfa[c, p] * sfa[c, q] = ||x_p||^2 - 2 x_p.s_q + ||s_q||^2
    xx = jnp.sum(xf * xf, axis=1, keepdims=True)              # (B, 1, P)
    ss = jnp.sum(sf * sf, axis=1, keepdims=True)              # (B, 1, S)
    xfa = jnp.concatenate([-2.0 * xf, xx, jnp.ones_like(xx)], axis=1)
    sfa = jnp.concatenate([sf, jnp.ones_like(ss), ss], axis=1)
    Ca = Cf + 2
    pad = (-Ca) % 8                                           # sublane-align channels
    if pad:
        xfa = jnp.pad(xfa, ((0, 0), (0, pad), (0, 0)))
        sfa = jnp.pad(sfa, ((0, 0), (0, pad), (0, 0)))
        Ca += pad

    # index bits of the packed key (distance keeps the remaining 31 - ib bits;
    # for very large P the distance resolution drops accordingly — acceptable
    # for nearest-neighbour selection, near-ties may swap order).
    ib = max(1, math.ceil(math.log2(P)))
    bt, pt = _choose_tiles(B, Ca, P, S, k_eff)
    grid = (B // bt, P // pt)

    kernel = _make_knn_kernel(k_eff=k_eff, ib=ib, bt=bt)
    return pl.pallas_call(
        kernel,
        out_shape=jax.ShapeDtypeStruct((B, k_eff, S), jnp.int32),
        grid_spec=pltpu.PrefetchScalarGridSpec(
            num_scalar_prefetch=0,
            grid=grid,
            in_specs=[
                pl.BlockSpec((bt, Ca, pt), lambda bi, pi: (bi, 0, pi)),
                pl.BlockSpec((bt, Ca, S), lambda bi, pi: (bi, 0, 0)),
            ],
            out_specs=pl.BlockSpec((bt, k_eff, S), lambda bi, pi: (bi, 0, 0)),
            scratch_shapes=[pltpu.VMEM((bt, k_eff, S), jnp.int32)],
        ),
        compiler_params=pltpu.CompilerParams(
            dimension_semantics=("parallel", "arbitrary"),
            vmem_limit_bytes=32 * 1024 * 1024),
    )(xfa, sfa)


# ----------------------------------------------------------------------------
# Dynamic_sampling forward (glue in JAX, knn in Pallas)
# ----------------------------------------------------------------------------
def dynamic_sampling_forward(x, s_num, *, k, dilation=1, key,
                             is_temp=False, temp_ratio=0.0):
    """Reproduces Dynamic_sampling.forward.  x: (B, C, P) float32.
    Returns (B, C, s_num, k)."""
    B, C, P = x.shape
    rand_num = jax.random.uniform(key, (B, P), dtype=x.dtype)

    if s_num <= P:
        rand_num = jnp.abs(rand_num)
        if is_temp:
            assert temp_ratio > 0
            temp_point = max(1, int(s_num * temp_ratio))
            act = x[:, 4, :]
            act = 1.0 - jnp.abs(act) * 2.0
            rand_num = rand_num * lax.stop_gradient(act)
            perm_all = jnp.argsort(rand_num, axis=1)
            p0 = perm_all[:, :temp_point]
            if s_num - temp_point == 0:
                perm = p0
            else:
                p1 = perm_all[:, -(s_num - temp_point):]
                perm = jnp.concatenate([p0, p1], axis=1)
        else:
            perm = jnp.argsort(rand_num, axis=1)[:, :s_num]
        gather_idx = jnp.broadcast_to(perm[:, None, :], (B, C, perm.shape[1]))
        select_point = jnp.take_along_axis(x, gather_idx, axis=2)
    else:
        perm = jnp.argsort(rand_num, axis=1)[:, : s_num - P]
        gather_idx = jnp.broadcast_to(perm[:, None, :], (B, C, perm.shape[1]))
        extra = jnp.take_along_axis(x, gather_idx, axis=2)
        select_point = jnp.concatenate([x, extra], axis=2)

    if C == 5:
        xf, sf = x[:, :3, :], select_point[:, :3, :]
    else:
        xf, sf = x[:, 5:, :], select_point[:, 5:, :]

    # Pallas knn already returns the torch layout (B, k*dilation, S): no transpose.
    indx = knn_pallas(xf, sf, k * dilation)
    indx = indx[:, :, ::dilation]                    # mirrors idx[:, :, ::dilation]

    idx_base = (jnp.arange(B, dtype=indx.dtype) * P).reshape(-1, 1, 1)
    indx = (indx + idx_base).reshape(-1)

    xt = jnp.transpose(x, (0, 2, 1)).reshape(B * P, C)
    feature = xt[indx, :]
    feature = feature.reshape(B, s_num, k, C)
    return jnp.transpose(feature, (0, 3, 1, 2))      # (B, C, s_num, k)


# ----------------------------------------------------------------------------
if __name__ == "__main__":
    B, C, P = 2, 5, 128
    s_num, k, dilation = 64, 4, 1

    key = jax.random.PRNGKey(0)
    kx, kr = jax.random.split(key)
    x = jax.random.normal(kx, (B, C, P), dtype=jnp.float32)

    out = dynamic_sampling_forward(x, s_num, k=k, dilation=dilation, key=kr)
    out = jax.block_until_ready(out)
    assert out.shape == (B, C, s_num, k), out.shape

    # Validate the Pallas knn on the same sampling with a rank/distance-tolerant
    # check (robust to FP association order and exact-distance ties).
    rand_num = jnp.abs(jax.random.uniform(kr, (B, P), dtype=x.dtype))
    perm = jnp.argsort(rand_num, axis=1)[:, :s_num]
    sel = jnp.take_along_axis(
        x, jnp.broadcast_to(perm[:, None, :], (B, C, s_num)), axis=2)
    xf, sf = x[:, :3, :], sel[:, :3, :]

    idx_pallas = jax.block_until_ready(knn_pallas(xf, sf, k * dilation))
    assert idx_pallas.shape == (B, k * dilation, s_num), idx_pallas.shape
    assert int(idx_pallas.min()) >= 0 and int(idx_pallas.max()) < P

    d2 = jnp.sum((xf[:, :, :, None] - sf[:, :, None, :]) ** 2, axis=1)  # (B, P, S)
    d2_sorted = jnp.sort(d2, axis=1)[:, :k * dilation, :]               # (B, k, S)
    d2_pallas = jnp.take_along_axis(d2, idx_pallas, axis=1)             # (B, k, S)
    assert jnp.allclose(d2_pallas, d2_sorted, rtol=1e-2, atol=1e-4), (
        "Pallas knn distance mismatch, max abs err = "
        + str(float(jnp.max(jnp.abs(d2_pallas - d2_sorted)))))

    print("KERNEL_OK")
</pallas_src>

<mosaic_0001>
module attributes {stable_mosaic.version = 11 : i64} {
  func.func @kernel(%arg0: i32, %arg1: i32, %arg2: memref<2x8x128xf32, #tpu.memory_space<vmem>>, %arg3: memref<2x8x64xf32, #tpu.memory_space<vmem>>, %arg4: memref<2x4x64xi32, #tpu.memory_space<vmem>>, %arg5: memref<2x4x64xi32, #tpu.memory_space<vmem>>) attributes {dimension_semantics = [#tpu.dimension_semantics<parallel>, #tpu.dimension_semantics<arbitrary>], iteration_bounds = array<i64: 1, 1>, scalar_prefetch = 0 : i64, scratch_operands = 1 : i64, tpu.core_type = #tpu.core_type<tc>, window_params = [{transform_indices = @transform_0, window_bounds = array<i64: 2, 8, 128>}, {transform_indices = @transform_1, window_bounds = array<i64: 2, 8, 64>}, {transform_indices = @transform_2, window_bounds = array<i64: 2, 4, 64>}]} {
    %c0_i32 = arith.constant 0 : i32
    %0 = arith.cmpi eq, %arg1, %c0_i32 : i32
    %1 = arith.extui %0 : i1 to i32
    %c0_i32_0 = arith.constant 0 : i32
    %2 = arith.cmpi ne, %1, %c0_i32_0 : i32
    scf.if %2 {
      %c-1_i32_114 = arith.constant -1 : i32
      %224 = vector.broadcast %c-1_i32_114 : i32 to vector<2x4x64xi32>
      %c0_115 = arith.constant 0 : index
      %c0_116 = arith.constant 0 : index
      %c0_117 = arith.constant 0 : index
      %225 = vector.load %arg5[%c0_115, %c0_116, %c0_117] : memref<2x4x64xi32, #tpu.memory_space<vmem>>, vector<2x4x64xi32>
      tpu.vector_store %arg5[%c0_115, %c0_116, %c0_117], %224 {strides = array<i32>} : memref<2x4x64xi32, #tpu.memory_space<vmem>>, vector<2x4x64xi32>,
    } else {
    }
    %c128_i32 = arith.constant 128 : i32
    %3 = arith.muli %arg1, %c128_i32 : i32
    %c0 = arith.constant 0 : index
    %c0_1 = arith.constant 0 : index
    %c0_2 = arith.constant 0 : index
    %4 = vector.load %arg2[%c0, %c0_1, %c0_2] : memref<2x8x128xf32, #tpu.memory_space<vmem>>, vector<1x8x128xf32>
    %5 = vector.shape_cast %4 : vector<1x8x128xf32> to vector<8x128xf32>
    %c0_3 = arith.constant 0 : index
    %c0_4 = arith.constant 0 : index
    %c0_5 = arith.constant 0 : index
    %6 = vector.load %arg3[%c0_3, %c0_4, %c0_5] : memref<2x8x64xf32, #tpu.memory_space<vmem>>, vector<1x8x64xf32>
    %7 = vector.shape_cast %6 : vector<1x8x64xf32> to vector<8x64xf32>
    %cst = arith.constant dense<0.000000e+00> : vector<128x64xf32>
    %8 = tpu.matmul %5, %7, %cst {dimension_numbers = #tpu.dot_dimension_numbers<[0], [0], [1], [1], [0, 1, 1, 1], [], []>} : vector<8x128xf32>, vector<8x64xf32>, vector<128x64xf32> -> vector<128x64xf32>
    %cst_6 = arith.constant 0.000000e+00 : f32
    %9 = vector.broadcast %cst_6 : f32 to vector<128x64xf32>
    %10 = arith.maximumf %8, %9 : vector<128x64xf32>
    %11 = tpu.bitcast %10 : vector<128x64xf32> -> vector<128x64xi32>
    %c7_i32 = arith.constant 7 : i32
    %12 = vector.broadcast %c7_i32 : i32 to vector<128x64xi32>
    %13 = arith.shrsi %11, %12 : vector<128x64xi32>
    %c16777215_i32 = arith.constant 16777215 : i32
    %14 = vector.broadcast %c16777215_i32 : i32 to vector<128x64xi32>
    %15 = arith.subi %14, %13 : vector<128x64xi32>
    %16 = tpu.iota {dimensions = array<i32: 0>} : vector<128x64xi32>
    %17 = vector.broadcast %3 : i32 to vector<128x64xi32>
    %18 = arith.addi %16, %17 : vector<128x64xi32>
    %c7_i32_7 = arith.constant 7 : i32
    %19 = vector.broadcast %c7_i32_7 : i32 to vector<128x64xi32>
    %20 = arith.shli %15, %19 : vector<128x64xi32>
    %c127_i32 = arith.constant 127 : i32
    %21 = vector.broadcast %c127_i32 : i32 to vector<128x64xi32>
    %22 = arith.subi %21, %18 : vector<128x64xi32>
    %23 = arith.ori %20, %22 : vector<128x64xi32>
    %c0_8 = arith.constant 0 : index
    %c0_9 = arith.constant 0 : index
    %c0_10 = arith.constant 0 : index
    %24 = vector.load %arg5[%c0_8, %c0_9, %c0_10] : memref<2x4x64xi32, #tpu.memory_space<vmem>>, vector<1x4x64xi32>
    %25 = vector.shape_cast %24 : vector<1x4x64xi32> to vector<4x64xi32>
    %cst_11 = arith.constant dense<-2147483648> : vector<64xi32>
    %26 = vector.multi_reduction <maxsi>, %23, %cst_11 [0] : vector<128x64xi32> to vector<64xi32>
    %27 = vector.shape_cast %26 : vector<64xi32> to vector<1x64xi32>
    %cst_12 = arith.constant dense<-2147483648> : vector<64xi32>
    %28 = vector.multi_reduction <maxsi>, %25, %cst_12 [0] : vector<4x64xi32> to vector<64xi32>
    %29 = vector.shape_cast %28 : vector<64xi32> to vector<1x64xi32>
    %30 = arith.maxsi %27, %29 : vector<1x64xi32>
    %31 = vector.shape_cast %30 : vector<1x64xi32> to vector<64xi32>
    %c0_13 = arith.constant 0 : index
    %c0_14 = arith.constant 0 : index
    %c0_15 = arith.constant 0 : index
    %32 = vector.load %arg5[%c0_13, %c0_14, %c0_15] : memref<2x4x64xi32, #tpu.memory_space<vmem>>, vector<1x1x64xi32>
    %33 = vector.shape_cast %32 : vector<1x1x64xi32> to vector<64xi32>
    %34 = vector.shape_cast %31 : vector<64xi32> to vector<1x1x64xi32>
    tpu.vector_store %arg5[%c0_13, %c0_14, %c0_15], %34 {strides = array<i32>} : memref<2x4x64xi32, #tpu.memory_space<vmem>>, vector<1x1x64xi32>,
    %c127_i32_16 = arith.constant 127 : i32
    %35 = vector.broadcast %c127_i32_16 : i32 to vector<64xi32>
    %36 = arith.andi %31, %35 : vector<64xi32>
    %c127_i32_17 = arith.constant 127 : i32
    %37 = vector.broadcast %c127_i32_17 : i32 to vector<64xi32>
    %38 = arith.subi %37, %36 : vector<64xi32>
    %c0_18 = arith.constant 0 : index
    %c0_19 = arith.constant 0 : index
    %c0_20 = arith.constant 0 : index
    %39 = vector.load %arg4[%c0_18, %c0_19, %c0_20] : memref<2x4x64xi32, #tpu.memory_space<vmem>>, vector<1x1x64xi32>
    %40 = vector.shape_cast %39 : vector<1x1x64xi32> to vector<64xi32>
    %41 = vector.shape_cast %38 : vector<64xi32> to vector<1x1x64xi32>
    tpu.vector_store %arg4[%c0_18, %c0_19, %c0_20], %41 {strides = array<i32>} : memref<2x4x64xi32, #tpu.memory_space<vmem>>, vector<1x1x64xi32>,
    %42 = vector.broadcast %30 : vector<1x64xi32> to vector<128x64xi32>
    %43 = arith.cmpi slt, %23, %42 : vector<128x64xi32>
    %c-1_i32 = arith.constant -1 : i32
    %44 = vector.broadcast %c-1_i32 : i32 to vector<128x64xi32>
    %45 = arith.select %43, %23, %44 : vector<128x64xi1>, vector<128x64xi32>
    %46 = vector.broadcast %30 : vector<1x64xi32> to vector<4x64xi32>
    %47 = arith.cmpi slt, %25, %46 : vector<4x64xi32>
    %c-1_i32_21 = arith.constant -1 : i32
    %48 = vector.broadcast %c-1_i32_21 : i32 to vector<4x64xi32>
    %49 = arith.select %47, %25, %48 : vector<4x64xi1>, vector<4x64xi32>
    %cst_22 = arith.constant dense<-2147483648> : vector<64xi32>
    %50 = vector.multi_reduction <maxsi>, %45, %cst_22 [0] : vector<128x64xi32> to vector<64xi32>
    %51 = vector.shape_cast %50 : vector<64xi32> to vector<1x64xi32>
    %cst_23 = arith.constant dense<-2147483648> : vector<64xi32>
    %52 = vector.multi_reduction <maxsi>, %49, %cst_23 [0] : vector<4x64xi32> to vector<64xi32>
    %53 = vector.shape_cast %52 : vector<64xi32> to vector<1x64xi32>
    %54 = arith.maxsi %51, %53 : vector<1x64xi32>
    %55 = vector.shape_cast %54 : vector<1x64xi32> to vector<64xi32>
    %c0_24 = arith.constant 0 : index
    %c1 = arith.constant 1 : index
    %c0_25 = arith.constant 0 : index
    %56 = vector.load %arg5[%c0_24, %c1, %c0_25] : memref<2x4x64xi32, #tpu.memory_space<vmem>>, vector<1x1x64xi32>
    %57 = vector.shape_cast %56 : vector<1x1x64xi32> to vector<64xi32>
    %58 = vector.shape_cast %55 : vector<64xi32> to vector<1x1x64xi32>
    tpu.vector_store %arg5[%c0_24, %c1, %c0_25], %58 {strides = array<i32>} : memref<2x4x64xi32, #tpu.memory_space<vmem>>, vector<1x1x64xi32>,
    %c127_i32_26 = arith.constant 127 : i32
    %59 = vector.broadcast %c127_i32_26 : i32 to vector<64xi32>
    %60 = arith.andi %55, %59 : vector<64xi32>
    %c127_i32_27 = arith.constant 127 : i32
    %61 = vector.broadcast %c127_i32_27 : i32 to vector<64xi32>
    %62 = arith.subi %61, %60 : vector<64xi32>
    %c0_28 = arith.constant 0 : index
    %c1_29 = arith.constant 1 : index
    %c0_30 = arith.constant 0 : index
    %63 = vector.load %arg4[%c0_28, %c1_29, %c0_30] : memref<2x4x64xi32, #tpu.memory_space<vmem>>, vector<1x1x64xi32>
    %64 = vector.shape_cast %63 : vector<1x1x64xi32> to vector<64xi32>
    %65 = vector.shape_cast %62 : vector<64xi32> to vector<1x1x64xi32>
    tpu.vector_store %arg4[%c0_28, %c1_29, %c0_30], %65 {strides = array<i32>} : memref<2x4x64xi32, #tpu.memory_space<vmem>>, vector<1x1x64xi32>,
    %66 = vector.broadcast %54 : vector<1x64xi32> to vector<128x64xi32>
    %67 = arith.cmpi slt, %45, %66 : vector<128x64xi32>
    %c-1_i32_31 = arith.constant -1 : i32
    %68 = vector.broadcast %c-1_i32_31 : i32 to vector<128x64xi32>
    %69 = arith.select %67, %45, %68 : vector<128x64xi1>, vector<128x64xi32>
    %70 = vector.broadcast %54 : vector<1x64xi32> to vector<4x64xi32>
    %71 = arith.cmpi slt, %49, %70 : vector<4x64xi32>
    %c-1_i32_32 = arith.constant -1 : i32
    %72 = vector.broadcast %c-1_i32_32 : i32 to vector<4x64xi32>
    %73 = arith.select %71, %49, %72 : vector<4x64xi1>, vector<4x64xi32>
    %cst_33 = arith.constant dense<-2147483648> : vector<64xi32>
    %74 = vector.multi_reduction <maxsi>, %69, %cst_33 [0] : vector<128x64xi32> to vector<64xi32>
    %75 = vector.shape_cast %74 : vector<64xi32> to vector<1x64xi32>
    %cst_34 = arith.constant dense<-2147483648> : vector<64xi32>
    %76 = vector.multi_reduction <maxsi>, %73, %cst_34 [0] : vector<4x64xi32> to vector<64xi32>
    %77 = vector.shape_cast %76 : vector<64xi32> to vector<1x64xi32>
    %78 = arith.maxsi %75, %77 : vector<1x64xi32>
    %79 = vector.shape_cast %78 : vector<1x64xi32> to vector<64xi32>
    %c0_35 = arith.constant 0 : index
    %c2 = arith.constant 2 : index
    %c0_36 = arith.constant 0 : index
    %80 = vector.load %arg5[%c0_35, %c2, %c0_36] : memref<2x4x64xi32, #tpu.memory_space<vmem>>, vector<1x1x64xi32>
    %81 = vector.shape_cast %80 : vector<1x1x64xi32> to vector<64xi32>
    %82 = vector.shape_cast %79 : vector<64xi32> to vector<1x1x64xi32>
    tpu.vector_store %arg5[%c0_35, %c2, %c0_36], %82 {strides = array<i32>} : memref<2x4x64xi32, #tpu.memory_space<vmem>>, vector<1x1x64xi32>,
    %c127_i32_37 = arith.constant 127 : i32
    %83 = vector.broadcast %c127_i32_37 : i32 to vector<64xi32>
    %84 = arith.andi %79, %83 : vector<64xi32>
    %c127_i32_38 = arith.constant 127 : i32
    %85 = vector.broadcast %c127_i32_38 : i32 to vector<64xi32>
    %86 = arith.subi %85, %84 : vector<64xi32>
    %c0_39 = arith.constant 0 : index
    %c2_40 = arith.constant 2 : index
    %c0_41 = arith.constant 0 : index
    %87 = vector.load %arg4[%c0_39, %c2_40, %c0_41] : memref<2x4x64xi32, #tpu.memory_space<vmem>>, vector<1x1x64xi32>
    %88 = vector.shape_cast %87 : vector<1x1x64xi32> to vector<64xi32>
    %89 = vector.shape_cast %86 : vector<64xi32> to vector<1x1x64xi32>
    tpu.vector_store %arg4[%c0_39, %c2_40, %c0_41], %89 {strides = array<i32>} : memref<2x4x64xi32, #tpu.memory_space<vmem>>, vector<1x1x64xi32>,
    %90 = vector.broadcast %78 : vector<1x64xi32> to vector<128x64xi32>
    %91 = arith.cmpi slt, %69, %90 : vector<128x64xi32>
    %c-1_i32_42 = arith.constant -1 : i32
    %92 = vector.broadcast %c-1_i32_42 : i32 to vector<128x64xi32>
    %93 = arith.select %91, %69, %92 : vector<128x64xi1>, vector<128x64xi32>
    %94 = vector.broadcast %78 : vector<1x64xi32> to vector<4x64xi32>
    %95 = arith.cmpi slt, %73, %94 : vector<4x64xi32>
    %c-1_i32_43 = arith.constant -1 : i32
    %96 = vector.broadcast %c-1_i32_43 : i32 to vector<4x64xi32>
    %97 = arith.select %95, %73, %96 : vector<4x64xi1>, vector<4x64xi32>
    %cst_44 = arith.constant dense<-2147483648> : vector<64xi32>
    %98 = vector.multi_reduction <maxsi>, %93, %cst_44 [0] : vector<128x64xi32> to vector<64xi32>
    %99 = vector.shape_cast %98 : vector<64xi32> to vector<1x64xi32>
    %cst_45 = arith.constant dense<-2147483648> : vector<64xi32>
    %100 = vector.multi_reduction <maxsi>, %97, %cst_45 [0] : vector<4x64xi32> to vector<64xi32>
    %101 = vector.shape_cast %100 : vector<64xi32> to vector<1x64xi32>
    %102 = arith.maxsi %99, %101 : vector<1x64xi32>
    %103 = vector.shape_cast %102 : vector<1x64xi32> to vector<64xi32>
    %c0_46 = arith.constant 0 : index
    %c3 = arith.constant 3 : index
    %c0_47 = arith.constant 0 : index
    %104 = vector.load %arg5[%c0_46, %c3, %c0_47] : memref<2x4x64xi32, #tpu.memory_space<vmem>>, vector<1x1x64xi32>
    %105 = vector.shape_cast %104 : vector<1x1x64xi32> to vector<64xi32>
    %106 = vector.shape_cast %103 : vector<64xi32> to vector<1x1x64xi32>
    tpu.vector_store %arg5[%c0_46, %c3, %c0_47], %106 {strides = array<i32>} : memref<2x4x64xi32, #tpu.memory_space<vmem>>, vector<1x1x64xi32>,
    %c127_i32_48 = arith.constant 127 : i32
    %107 = vector.broadcast %c127_i32_48 : i32 to vector<64xi32>
    %108 = arith.andi %103, %107 : vector<64xi32>
    %c127_i32_49 = arith.constant 127 : i32
    %109 = vector.broadcast %c127_i32_49 : i32 to vector<64xi32>
    %110 = arith.subi %109, %108 : vector<64xi32>
    %c0_50 = arith.constant 0 : index
    %c3_51 = arith.constant 3 : index
    %c0_52 = arith.constant 0 : index
    %111 = vector.load %arg4[%c0_50, %c3_51, %c0_52] : memref<2x4x64xi32, #tpu.memory_space<vmem>>, vector<1x1x64xi32>
    %112 = vector.shape_cast %111 : vector<1x1x64xi32> to vector<64xi32>
    %113 = vector.shape_cast %110 : vector<64xi32> to vector<1x1x64xi32>
    tpu.vector_store %arg4[%c0_50, %c3_51, %c0_52], %113 {strides = array<i32>} : memref<2x4x64xi32, #tpu.memory_space<vmem>>, vector<1x1x64xi32>,
    %c1_53 = arith.constant 1 : index
    %c0_54 = arith.constant 0 : index
    %c0_55 = arith.constant 0 : index
    %114 = vector.load %arg2[%c1_53, %c0_54, %c0_55] : memref<2x8x128xf32, #tpu.memory_space<vmem>>, vector<1x8x128xf32>
    %115 = vector.shape_cast %114 : vector<1x8x128xf32> to vector<8x128xf32>
    %c1_56 = arith.constant 1 : index
    %c0_57 = arith.constant 0 : index
    %c0_58 = arith.constant 0 : index
    %116 = vector.load %arg3[%c1_56, %c0_57, %c0_58] : memref<2x8x64xf32, #tpu.memory_space<vmem>>, vector<1x8x64xf32>
    %117 = vector.shape_cast %116 : vector<1x8x64xf32> to vector<8x64xf32>
    %cst_59 = arith.constant dense<0.000000e+00> : vector<128x64xf32>
    %118 = tpu.matmul %115, %117, %cst_59 {dimension_numbers = #tpu.dot_dimension_numbers<[0], [0], [1], [1], [0, 1, 1, 1], [], []>} : vector<8x128xf32>, vector<8x64xf32>, vector<128x64xf32> -> vector<128x64xf32>
    %cst_60 = arith.constant 0.000000e+00 : f32
    %119 = vector.broadcast %cst_60 : f32 to vector<128x64xf32>
    %120 = arith.maximumf %118, %119 : vector<128x64xf32>
    %121 = tpu.bitcast %120 : vector<128x64xf32> -> vector<128x64xi32>
    %c7_i32_61 = arith.constant 7 : i32
    %122 = vector.broadcast %c7_i32_61 : i32 to vector<128x64xi32>
    %123 = arith.shrsi %121, %122 : vector<128x64xi32>
    %c16777215_i32_62 = arith.constant 16777215 : i32
    %124 = vector.broadcast %c16777215_i32_62 : i32 to vector<128x64xi32>
    %125 = arith.subi %124, %123 : vector<128x64xi32>
    %126 = tpu.iota {dimensions = array<i32: 0>} : vector<128x64xi32>
    %127 = vector.broadcast %3 : i32 to vector<128x64xi32>
    %128 = arith.addi %126, %127 : vector<128x64xi32>
    %c7_i32_63 = arith.constant 7 : i32
    %129 = vector.broadcast %c7_i32_63 : i32 to vector<128x64xi32>
    %130 = arith.shli %125, %129 : vector<128x64xi32>
    %c127_i32_64 = arith.constant 127 : i32
    %131 = vector.broadcast %c127_i32_64 : i32 to vector<128x64xi32>
    %132 = arith.subi %131, %128 : vector<128x64xi32>
    %133 = arith.ori %130, %132 : vector<128x64xi32>
    %c1_65 = arith.constant 1 : index
    %c0_66 = arith.constant 0 : index
    %c0_67 = arith.constant 0 : index
    %134 = vector.load %arg5[%c1_65, %c0_66, %c0_67] : memref<2x4x64xi32, #tpu.memory_space<vmem>>, vector<1x4x64xi32>
    %135 = vector.shape_cast %134 : vector<1x4x64xi32> to vector<4x64xi32>
    %cst_68 = arith.constant dense<-2147483648> : vector<64xi32>
    %136 = vector.multi_reduction <maxsi>, %133, %cst_68 [0] : vector<128x64xi32> to vector<64xi32>
    %137 = vector.shape_cast %136 : vector<64xi32> to vector<1x64xi32>
    %cst_69 = arith.constant dense<-2147483648> : vector<64xi32>
    %138 = vector.multi_reduction <maxsi>, %135, %cst_69 [0] : vector<4x64xi32> to vector<64xi32>
    %139 = vector.shape_cast %138 : vector<64xi32> to vector<1x64xi32>
    %140 = arith.maxsi %137, %139 : vector<1x64xi32>
    %141 = vector.shape_cast %140 : vector<1x64xi32> to vector<64xi32>
    %c1_70 = arith.constant 1 : index
    %c0_71 = arith.constant 0 : index
    %c0_72 = arith.constant 0 : index
    %142 = vector.load %arg5[%c1_70, %c0_71, %c0_72] : memref<2x4x64xi32, #tpu.memory_space<vmem>>, vector<1x1x64xi32>
    %143 = vector.shape_cast %142 : vector<1x1x64xi32> to vector<64xi32>
    %144 = vector.shape_cast %141 : vector<64xi32> to vector<1x1x64xi32>
    tpu.vector_store %arg5[%c1_70, %c0_71, %c0_72], %144 {strides = array<i32>} : memref<2x4x64xi32, #tpu.memory_space<vmem>>, vector<1x1x64xi32>,
    %c127_i32_73 = arith.constant 127 : i32
    %145 = vector.broadcast %c127_i32_73 : i32 to vector<64xi32>
    %146 = arith.andi %141, %145 : vector<64xi32>
    %c127_i32_74 = arith.constant 127 : i32
    %147 = vector.broadcast %c127_i32_74 : i32 to vector<64xi32>
    %148 = arith.subi %147, %146 : vector<64xi32>
    %c1_75 = arith.constant 1 : index
    %c0_76 = arith.constant 0 : index
    %c0_77 = arith.constant 0 : index
    %149 = vector.load %arg4[%c1_75, %c0_76, %c0_77] : memref<2x4x64xi32, #tpu.memory_space<vmem>>, vector<1x1x64xi32>
    %150 = vector.shape_cast %149 : vector<1x1x64xi32> to vector<64xi32>
    %151 = vector.shape_cast %148 : vector<64xi32> to vector<1x1x64xi32>
    tpu.vector_store %arg4[%c1_75, %c0_76, %c0_77], %151 {strides = array<i32>} : memref<2x4x64xi32, #tpu.memory_space<vmem>>, vector<1x1x64xi32>,
    %152 = vector.broadcast %140 : vector<1x64xi32> to vector<128x64xi32>
    %153 = arith.cmpi slt, %133, %152 : vector<128x64xi32>
    %c-1_i32_78 = arith.constant -1 : i32
    %154 = vector.broadcast %c-1_i32_78 : i32 to vector<128x64xi32>
    %155 = arith.select %153, %133, %154 : vector<128x64xi1>, vector<128x64xi32>
    %156 = vector.broadcast %140 : vector<1x64xi32> to vector<4x64xi32>
    %157 = arith.cmpi slt, %135, %156 : vector<4x64xi32>
    %c-1_i32_79 = arith.constant -1 : i32
    %158 = vector.broadcast %c-1_i32_79 : i32 to vector<4x64xi32>
    %159 = arith.select %157, %135, %158 : vector<4x64xi1>, vector<4x64xi32>
    %cst_80 = arith.constant dense<-2147483648> : vector<64xi32>
    %160 = vector.multi_reduction <maxsi>, %155, %cst_80 [0] : vector<128x64xi32> to vector<64xi32>
    %161 = vector.shape_cast %160 : vector<64xi32> to vector<1x64xi32>
    %cst_81 = arith.constant dense<-2147483648> : vector<64xi32>
    %162 = vector.multi_reduction <maxsi>, %159, %cst_81 [0] : vector<4x64xi32> to vector<64xi32>
    %163 = vector.shape_cast %162 : vector<64xi32> to vector<1x64xi32>
    %164 = arith.maxsi %161, %163 : vector<1x64xi32>
    %165 = vector.shape_cast %164 : vector<1x64xi32> to vector<64xi32>
    %c1_82 = arith.constant 1 : index
    %c1_83 = arith.constant 1 : index
    %c0_84 = arith.constant 0 : index
    %166 = vector.load %arg5[%c1_82, %c1_83, %c0_84] : memref<2x4x64xi32, #tpu.memory_space<vmem>>, vector<1x1x64xi32>
    %167 = vector.shape_cast %166 : vector<1x1x64xi32> to vector<64xi32>
    %168 = vector.shape_cast %165 : vector<64xi32> to vector<1x1x64xi32>
    tpu.vector_store %arg5[%c1_82, %c1_83, %c0_84], %168 {strides = array<i32>} : memref<2x4x64xi32, #tpu.memory_space<vmem>>, vector<1x1x64xi32>,
    %c127_i32_85 = arith.constant 127 : i32
    %169 = vector.broadcast %c127_i32_85 : i32 to vector<64xi32>
    %170 = arith.andi %165, %169 : vector<64xi32>
    %c127_i32_86 = arith.constant 127 : i32
    %171 = vector.broadcast %c127_i32_86 : i32 to vector<64xi32>
    %172 = arith.subi %171, %170 : vector<64xi32>
    %c1_87 = arith.constant 1 : index
    %c1_88 = arith.constant 1 : index
    %c0_89 = arith.constant 0 : index
    %173 = vector.load %arg4[%c1_87, %c1_88, %c0_89] : memref<2x4x64xi32, #tpu.memory_space<vmem>>, vector<1x1x64xi32>
    %174 = vector.shape_cast %173 : vector<1x1x64xi32> to vector<64xi32>
    %175 = vector.shape_cast %172 : vector<64xi32> to vector<1x1x64xi32>
    tpu.vector_store %arg4[%c1_87, %c1_88, %c0_89], %175 {strides = array<i32>} : memref<2x4x64xi32, #tpu.memory_space<vmem>>, vector<1x1x64xi32>,
    %176 = vector.broadcast %164 : vector<1x64xi32> to vector<128x64xi32>
    %177 = arith.cmpi slt, %155, %176 : vector<128x64xi32>
    %c-1_i32_90 = arith.constant -1 : i32
    %178 = vector.broadcast %c-1_i32_90 : i32 to vector<128x64xi32>
    %179 = arith.select %177, %155, %178 : vector<128x64xi1>, vector<128x64xi32>
    %180 = vector.broadcast %164 : vector<1x64xi32> to vector<4x64xi32>
    %181 = arith.cmpi slt, %159, %180 : vector<4x64xi32>
    %c-1_i32_91 = arith.constant -1 : i32
    %182 = vector.broadcast %c-1_i32_91 : i32 to vector<4x64xi32>
    %183 = arith.select %181, %159, %182 : vector<4x64xi1>, vector<4x64xi32>
    %cst_92 = arith.constant dense<-2147483648> : vector<64xi32>
    %184 = vector.multi_reduction <maxsi>, %179, %cst_92 [0] : vector<128x64xi32> to vector<64xi32>
    %185 = vector.shape_cast %184 : vector<64xi32> to vector<1x64xi32>
    %cst_93 = arith.constant dense<-2147483648> : vector<64xi32>
    %186 = vector.multi_reduction <maxsi>, %183, %cst_93 [0] : vector<4x64xi32> to vector<64xi32>
    %187 = vector.shape_cast %186 : vector<64xi32> to vector<1x64xi32>
    %188 = arith.maxsi %185, %187 : vector<1x64xi32>
    %189 = vector.shape_cast %188 : vector<1x64xi32> to vector<64xi32>
    %c1_94 = arith.constant 1 : index
    %c2_95 = arith.constant 2 : index
    %c0_96 = arith.constant 0 : index
    %190 = vector.load %arg5[%c1_94, %c2_95, %c0_96] : memref<2x4x64xi32, #tpu.memory_space<vmem>>, vector<1x1x64xi32>
    %191 = vector.shape_cast %190 : vector<1x1x64xi32> to vector<64xi32>
    %192 = vector.shape_cast %189 : vector<64xi32> to vector<1x1x64xi32>
    tpu.vector_store %arg5[%c1_94, %c2_95, %c0_96], %192 {strides = array<i32>} : memref<2x4x64xi32, #tpu.memory_space<vmem>>, vector<1x1x64xi32>,
    %c127_i32_97 = arith.constant 127 : i32
    %193 = vector.broadcast %c127_i32_97 : i32 to vector<64xi32>
    %194 = arith.andi %189, %193 : vector<64xi32>
    %c127_i32_98 = arith.constant 127 : i32
    %195 = vector.broadcast %c127_i32_98 : i32 to vector<64xi32>
    %196 = arith.subi %195, %194 : vector<64xi32>
    %c1_99 = arith.constant 1 : index
    %c2_100 = arith.constant 2 : index
    %c0_101 = arith.constant 0 : index
    %197 = vector.load %arg4[%c1_99, %c2_100, %c0_101] : memref<2x4x64xi32, #tpu.memory_space<vmem>>, vector<1x1x64xi32>
    %198 = vector.shape_cast %197 : vector<1x1x64xi32> to vector<64xi32>
    %199 = vector.shape_cast %196 : vector<64xi32> to vector<1x1x64xi32>
    tpu.vector_store %arg4[%c1_99, %c2_100, %c0_101], %199 {strides = array<i32>} : memref<2x4x64xi32, #tpu.memory_space<vmem>>, vector<1x1x64xi32>,
    %200 = vector.broadcast %188 : vector<1x64xi32> to vector<128x64xi32>
    %201 = arith.cmpi slt, %179, %200 : vector<128x64xi32>
    %c-1_i32_102 = arith.constant -1 : i32
    %202 = vector.broadcast %c-1_i32_102 : i32 to vector<128x64xi32>
    %203 = arith.select %201, %179, %202 : vector<128x64xi1>, vector<128x64xi32>
    %204 = vector.broadcast %188 : vector<1x64xi32> to vector<4x64xi32>
    %205 = arith.cmpi slt, %183, %204 : vector<4x64xi32>
    %c-1_i32_103 = arith.constant -1 : i32
    %206 = vector.broadcast %c-1_i32_103 : i32 to vector<4x64xi32>
    %207 = arith.select %205, %183, %206 : vector<4x64xi1>, vector<4x64xi32>
    %cst_104 = arith.constant dense<-2147483648> : vector<64xi32>
    %208 = vector.multi_reduction <maxsi>, %203, %cst_104 [0] : vector<128x64xi32> to vector<64xi32>
    %209 = vector.shape_cast %208 : vector<64xi32> to vector<1x64xi32>
    %cst_105 = arith.constant dense<-2147483648> : vector<64xi32>
    %210 = vector.multi_reduction <maxsi>, %207, %cst_105 [0] : vector<4x64xi32> to vector<64xi32>
    %211 = vector.shape_cast %210 : vector<64xi32> to vector<1x64xi32>
    %212 = arith.maxsi %209, %211 : vector<1x64xi32>
    %213 = vector.shape_cast %212 : vector<1x64xi32> to vector<64xi32>
    %c1_106 = arith.constant 1 : index
    %c3_107 = arith.constant 3 : index
    %c0_108 = arith.constant 0 : index
    %214 = vector.load %arg5[%c1_106, %c3_107, %c0_108] : memref<2x4x64xi32, #tpu.memory_space<vmem>>, vector<1x1x64xi32>
    %215 = vector.shape_cast %214 : vector<1x1x64xi32> to vector<64xi32>
    %216 = vector.shape_cast %213 : vector<64xi32> to vector<1x1x64xi32>
    tpu.vector_store %arg5[%c1_106, %c3_107, %c0_108], %216 {strides = array<i32>} : memref<2x4x64xi32, #tpu.memory_space<vmem>>, vector<1x1x64xi32>,
    %c127_i32_109 = arith.constant 127 : i32
    %217 = vector.broadcast %c127_i32_109 : i32 to vector<64xi32>
    %218 = arith.andi %213, %217 : vector<64xi32>
    %c127_i32_110 = arith.constant 127 : i32
    %219 = vector.broadcast %c127_i32_110 : i32 to vector<64xi32>
    %220 = arith.subi %219, %218 : vector<64xi32>
    %c1_111 = arith.constant 1 : index
    %c3_112 = arith.constant 3 : index
    %c0_113 = arith.constant 0 : index
    %221 = vector.load %arg4[%c1_111, %c3_112, %c0_113] : memref<2x4x64xi32, #tpu.memory_space<vmem>>, vector<1x1x64xi32>
    %222 = vector.shape_cast %221 : vector<1x1x64xi32> to vector<64xi32>
    %223 = vector.shape_cast %220 : vector<64xi32> to vector<1x1x64xi32>
    tpu.vector_store %arg4[%c1_111, %c3_112, %c0_113], %223 {strides = array<i32>} : memref<2x4x64xi32, #tpu.memory_space<vmem>>, vector<1x1x64xi32>,
    return
  }
  func.func @transform_0(%arg0: i32, %arg1: i32) -> (i32, i32, i32) {
    %c0_i32 = arith.constant 0 : i32
    %c0_i32_0 = arith.constant 0 : i32
    return %arg0, %c0_i32, %arg1 : i32, i32, i32
  }
  func.func @transform_1(%arg0: i32, %arg1: i32) -> (i32, i32, i32) {
    %c0_i32 = arith.constant 0 : i32
    %c0_i32_0 = arith.constant 0 : i32
    %c0_i32_1 = arith.constant 0 : i32
    return %arg0, %c0_i32, %c0_i32_0 : i32, i32, i32
  }
  func.func @transform_2(%arg0: i32, %arg1: i32) -> (i32, i32, i32) {
    %c0_i32 = arith.constant 0 : i32
    %c0_i32_0 = arith.constant 0 : i32
    %c0_i32_1 = arith.constant 0 : i32
    return %arg0, %c0_i32, %c0_i32_0 : i32, i32, i32
  }
}

</mosaic_0001>

<bundles_post_ra>
// kernel: tpu_custom_call.1
= control target key start
LH: loop header
LB: loop body
LE: loop exit
PB: predicated region body
PF: predicated region fallthrough
CT: control target
= control target key end

     0   :  { %7 = vsyncpa [#allocation4], 0  ;;  %s2894_s0 = inlined_call_operand.hbm [shape: f32[2,8,128], index: 0, kind: input, shape index: {}]   ;;  %s2895_s1 = inlined_call_operand.hbm [shape: f32[2,8,64], index: 1, kind: input, shape index: {}]   ;;  %s2896_s2 = inlined_call_operand.hbm [shape: s32[2,4,64], index: 2, kind: output, shape index: {}]  }
   0x1   :  { %8 = vsyncpa [#allocation7], 0 }
   0x2   :  { %9 = vsyncpa [#allocation5], 0  ;;  %s14_s11 = sshll.u32 %s2894_s0, 4  ;;  %s1511_s12 = smov [#allocation3]   ;;  %s15_s11 = int_to_ptr.hbm [resolvable:$true] %s14_s11 }
   0x3   :  { %s16_s13 = sshll.u32 %s1511_s12, 4  ;;  %s27_s16 = sshll.u32 %s2895_s1, 4  ;;  %s17_s13 = int_to_ptr.vmem [resolvable:$true] %s16_s13  ;;  %s28_s16 = int_to_ptr.hbm [resolvable:$true] %s27_s16 }
   0x4   :  { %s1512_s17 = smov 128   ;;  %s1513_s18 = smov 8  }
   0x5   :  { %22 = dma.hbm_to_vmem [thread:$0]  %s15_s11, 256, %s17_s13, [#allocation4], %s1512_s17, %s1512_s17, %s1513_s18  }
   0x6   :  { %s1514_s19 = smov [#allocation6]  }
   0x7   :  { %s29_s20 = sshll.u32 %s1514_s19, 4  ;;  %s30_s20 = int_to_ptr.vmem [resolvable:$true] %s29_s20 }
   0x8   :  { %35 = dma.hbm_to_vmem [thread:$0]  %s28_s16, 256, %s30_s20, [#allocation7], %s1512_s17, %s1512_s17, %s1513_s18  }
   0x9   :  { %1505 = dma.done.wait [#allocation4], 256  }
   0xa   :  { %1506 = vsyncadd [#allocation4], 4294967040 }
   0xb   :  { %1507 = dma.done.wait [#allocation7], 256  }
   0xc   :  { %1508 = vsyncadd [#allocation7], 4294967040  ;;  %v52_v0 = vld [vmem:[#allocation3] sm:$0xff]  ;;  %v53_v1 = vld [vmem:[#allocation6] sm:$0xff]  ;;  %vm86_vm0 = vcmask 64512   ;;  %v264_v42 = vlaneseq  ;;  %vm2905_vm1 = vcmask 519168  }
   0xd   :  { %54 = vxpose.xlu0.b32.start.end [1/1] (short) %v52_v0, 128  ;;  %150 = vmatpush.msra.mxu0 %v53_v1  ;;  %v737_v2 = vld [vmem:[#allocation3 + $0x8] sm:$0xff]  ;;  %v739_v15 = vld [vmem:[#allocation6 + $0x8] sm:$0xff]  ;;  %v1515_v0 = vmov 4294967295   ;;  %vm2906_vm2 = vcmask 523264   ;;  %s1516_s0 = smov [#allocation8]   ;;  %s1376_s23 = sshll.u32 %s2896_s2, 4  ;;  %s1377_s23 = int_to_ptr.hbm [resolvable:$true] %s1376_s23 }
   0xe   :  { %1422 = vmatpush.msra.mxu2 %v53_v1  ;;  %835 = vmatpush.msra.mxu1 %v739_v15  ;;  %v1572_v48 = vshrl.u32 %v264_v42, 7  ;;  %49 = vst.msk [vmem:[#allocation2] sm:$0xf] %vm2905_vm1, %v1515_v0  ;;  %s1374_s1 = sshll.u32 %s1516_s0, 4  ;;  %s1517_s24 = smov 64   ;;  %s1375_s1 = int_to_ptr.vmem [resolvable:$true] %s1374_s1 }
   0xf   :  { %1423 = vmatpush.msra.mxu3 %v739_v15  ;;  %50 = vst.msk [vmem:[#allocation2 + $0x4] sm:$0xf] %vm2905_vm1, %v1515_v0  ;;  %s1518_s25 = smov 4  }
  0x10   :  { %v1577_v54 = vadd.s32 8, %v1572_v48  ;;  %v314_v56 = vsub.s32 127, %v1572_v48  ;;  %v1582_v62 = vadd.s32 16, %v1572_v48 }
  0x8d   :  { %740 = vxpose.xlu0.b32.start.end [1/1] (short) %v737_v2, 128  ;;  %v2912_v2 = vsub.s32 127, %v1577_v54 }
  0xb1   :  { %v70_v3 = vpop.trf.xlu0 }
  0xb2   :  { %1390 = vmatmul.msk.f32.vlgmr.msra.gmra.mxu0 %vm86_vm0, %v70_v3 }
  0xb9   :  { %v71_v4 = vpop.trf.xlu0 }
  0xba   :  { %1391 = vmatmul.msk.f32.gmra.mxu0 %vm86_vm0, %v71_v4 }
  0xc1   :  { %v72_v5 = vpop.trf.xlu0 }
  0xc2   :  { %1392 = vmatmul.msk.f32.gmra.mxu0 %vm86_vm0, %v72_v5 }
  0xc9   :  { %v73_v6 = vpop.trf.xlu0 }
  0xca   :  { %1393 = vmatmul.msk.f32.gmra.mxu0 %vm86_vm0, %v73_v6  ;;  %v1588_v6 = vadd.s32 24, %v1572_v48 }
  0xd1   :  { %v74_v7 = vpop.trf.xlu0 }
  0xd2   :  { %1394 = vmatmul.msk.f32.gmra.mxu0 %vm86_vm0, %v74_v7 }
  0xd9   :  { %v75_v8 = vpop.trf.xlu0 }
  0xda   :  { %1395 = vmatmul.msk.f32.gmra.mxu0 %vm86_vm0, %v75_v8 }
  0xe1   :  { %v76_v9 = vpop.trf.xlu0 }
  0xe2   :  { %1396 = vmatmul.msk.f32.gmra.mxu0 %vm86_vm0, %v76_v9 }
  0xe9   :  { %v77_v10 = vpop.trf.xlu0 }
  0xea   :  { %1397 = vmatmul.msk.f32.gmra.mxu0 %vm86_vm0, %v77_v10  ;;  %v1595_v10 = vadd.s32 32, %v1572_v48 }
  0xf1   :  { %v78_v11 = vpop.trf.xlu0 }
  0xf2   :  { %1398 = vmatmul.msk.f32.vlgmr.msra.gmra.mxu2 %vm86_vm0, %v78_v11 }
  0xf9   :  { %v79_v12 = vpop.trf.xlu0 }
  0xfa   :  { %1399 = vmatmul.msk.f32.gmra.mxu2 %vm86_vm0, %v79_v12  ;;  %v1598_v12 = vadd.s32 40, %v1572_v48 }
 0x101   :  { %v80_v13 = vpop.trf.xlu0 }
 0x102   :  { %1400 = vmatmul.msk.f32.gmra.mxu2 %vm86_vm0, %v80_v13 }
 0x109   :  { %v81_v14 = vpop.trf.xlu0 }
 0x10a   :  { %1401 = vmatmul.msk.f32.gmra.mxu2 %vm86_vm0, %v81_v14  ;;  %v2911_v14 = vsub.s32 127, %v1582_v62 }
 0x111   :  { %v82_v16 = vpop.trf.xlu0 }
 0x112   :  { %1402 = vmatmul.msk.f32.gmra.mxu2 %vm86_vm0, %v82_v16 }
 0x119   :  { %v83_v17 = vpop.trf.xlu0 }
 0x11a   :  { %1403 = vmatmul.msk.f32.gmra.mxu2 %vm86_vm0, %v83_v17 }
 0x121   :  { %v84_v18 = vpop.trf.xlu0 }
 0x122   :  { %1404 = vmatmul.msk.f32.gmra.mxu2 %vm86_vm0, %v84_v18 }
 0x129   :  { %v85_v19 = vpop.trf.xlu0 }
 0x12a   :  { %1405 = vmatmul.msk.f32.gmra.mxu2 %vm86_vm0, %v85_v19 }
 0x12f   :  { %v152_v24 = vpop.f32.mrf.mxu0 }
 0x130   :  { %v200_v40 = vmax.f32 %v152_v24, 0.0 }
 0x131   :  { %v756_v20 = vpop.trf.xlu0 }
 0x132   :  { %1406 = vmatmul.msk.f32.vlgmr.msra.gmra.mxu1 %vm86_vm0, %v756_v20  ;;  %v232_v44 = vshra.s32 %v200_v40, 7  ;;  %v2909_v20 = vsub.s32 127, %v1588_v6  ;;  %v1630_v40 = vadd.s32 72, %v1572_v48 }
 0x134   :  { %v248_v50 = vsub.s32 16777215, %v232_v44 }
 0x136   :  { %v298_v59 = vshll.u32 %v248_v50, 7 }
 0x137   :  { %v155_v26 = vpop.f32.mrf.mxu0 }
 0x138   :  { %v201_v41 = vmax.f32 %v155_v26, 0.0  ;;  %v1592_v9 = vor.u32 %v314_v56, %v298_v59  ;;  %v2901_v59 = vsub.s32 127, %v1630_v40 }
 0x139   :  { %v757_v21 = vpop.trf.xlu0 }
 0x13a   :  { %1407 = vmatmul.msk.f32.gmra.mxu1 %vm86_vm0, %v757_v21  ;;  %v233_v47 = vshra.s32 %v201_v41, 7  ;;  %v1609_v24 = vsel %vm2906_vm2, %v1592_v9, 2147483648 }
 0x13c   :  { %v249_v53 = vsub.s32 16777215, %v233_v47 }
 0x13e   :  { %v299_v1 = vshll.u32 %v249_v53, 7 }
 0x13f   :  { %v158_v29 = vpop.f32.mrf.mxu0 }
 0x140   :  { %v202_v46 = vmax.f32 %v158_v29, 0.0  ;;  %v1603_v17 = vor.u32 %v2912_v2, %v299_v1 }
 0x141   :  { %v758_v22 = vpop.trf.xlu0 }
 0x142   :  { %1408 = vmatmul.msk.f32.gmra.mxu1 %vm86_vm0, %v758_v22  ;;  %v234_v52 = vshra.s32 %v202_v46, 7 }
 0x144   :  { %v250_v61 = vsub.s32 16777215, %v234_v52  ;;  %v1647_v52 = vadd.s32 64, %v1572_v48 }
 0x146   :  { %v300_v13 = vshll.u32 %v250_v61, 7 }
 0x147   :  { %v161_v31 = vpop.f32.mrf.mxu0 }
 0x148   :  { %v203_v57 = vmax.f32 %v161_v31, 0.0 }
 0x149   :  { %v759_v23 = vpop.trf.xlu0 }
 0x14a   :  { %1409 = vmatmul.msk.f32.gmra.mxu1 %vm86_vm0, %v759_v23  ;;  %v235_v5 = vshra.s32 %v203_v57, 7 }
 0x14c   :  { %v251_v19 = vsub.s32 16777215, %v235_v5  ;;  %v1663_v5 = vadd.s32 80, %v1572_v48 }
 0x14f   :  { %v164_v34 = vpop.f32.mrf.mxu0 }
 0x150   :  { %v204_v55 = vmax.f32 %v164_v34, 0.0  ;;  %v1626_v34 = vadd.s32 56, %v1572_v48 }
 0x151   :  { %v760_v25 = vpop.trf.xlu0 }
 0x152   :  { %1410 = vmatmul.msk.f32.gmra.mxu1 %vm86_vm0, %v760_v25  ;;  %v236_v3 = vshra.s32 %v204_v55, 7  ;;  %v318_v25 = vsub.s32 127, %v1595_v10 }
 0x154   :  { %v252_v18 = vsub.s32 16777215, %v236_v3 }
 0x157   :  { %v167_v37 = vpop.f32.mrf.mxu0 }
 0x158   :  { %v205_v51 = vmax.f32 %v167_v37, 0.0 }
 0x159   :  { %v761_v27 = vpop.trf.xlu0 }
 0x15a   :  { %1411 = vmatmul.msk.f32.gmra.mxu1 %vm86_vm0, %v761_v27  ;;  %v237_v60 = vshra.s32 %v205_v51, 7  ;;  %v319_v27 = vsub.s32 127, %v1598_v12 }
 0x15c   :  { %v253_v11 = vsub.s32 16777215, %v237_v60 }
 0x15e   :  { %v303_v26 = vshll.u32 %v253_v11, 7  ;;  %v2903_v11 = vsub.s32 127, %v1647_v52 }
 0x15f   :  { %v170_v45 = vpop.f32.mrf.mxu0 }
 0x160   :  { %v206_v63 = vmax.f32 %v170_v45, 0.0  ;;  %v1634_v42 = vor.u32 %v319_v27, %v303_v26 }
 0x161   :  { %v762_v28 = vpop.trf.xlu0 }
 0x162   :  { %1412 = vmatmul.msk.f32.gmra.mxu1 %vm86_vm0, %v762_v28  ;;  %v238_v15 = vshra.s32 %v206_v63, 7  ;;  %v1616_v28 = vor.u32 %v2911_v14, %v300_v13  ;;  %v355_v63 = vsel %vm2906_vm2, %v1634_v42, 2147483648 }
 0x164   :  { %v254_v29 = vsub.s32 16777215, %v238_v15  ;;  %v1639_v46 = vsel %vm2906_vm2, %v1616_v28, 2147483648 }
 0x167   :  { %v173_v4 = vpop.f32.mrf.mxu0 }
 0x168   :  { %v207_v16 = vmax.f32 %v173_v4, 0.0 }
 0x169   :  { %v763_v30 = vpop.trf.xlu0 }
 0x16a   :  { %1413 = vmatmul.msk.f32.gmra.mxu1 %vm86_vm0, %v763_v30  ;;  %v1619_v30 = vadd.s32 48, %v1572_v48  ;;  %v239_v31 = vshra.s32 %v207_v16, 7 }
 0x16c   :  { %v2910_v47 = vsub.s32 127, %v1619_v30  ;;  %v255_v50 = vsub.s32 16777215, %v239_v31 }
 0x16e   :  { %v305_v4 = vshll.u32 %v255_v50, 7 }
 0x171   :  { %v764_v32 = vpop.trf.xlu0 }
 0x172   :  { %1414 = vmatmul.msk.f32.vlgmr.msra.gmra.mxu3 %vm86_vm0, %v764_v32  ;;  %v1623_v32 = vsel %vm2906_vm2, %v1603_v17, 2147483648 }
 0x173   :  { %vm356_vm3 = vcmp.gt.s32.totalorder %v1623_v32, %v355_v63 }
 0x175   :  { %v1565_v33 = vpop.f32.mrf.mxu2 }
 0x176   :  { %v208_v21 = vmax.f32 %v1565_v33, 0.0  ;;  %v302_v33 = vshll.u32 %v252_v18, 7 }
 0x178   :  { %v240_v37 = vshra.s32 %v208_v21, 7  ;;  %v1644_v51 = vor.u32 %v318_v25, %v302_v33  ;;  %v1679_v21 = vadd.s32 96, %v1572_v48 }
 0x179   :  { %v765_v35 = vpop.trf.xlu0 }
 0x17a   :  { %1415 = vmatmul.msk.f32.gmra.mxu3 %vm86_vm0, %v765_v35  ;;  %v256_v57 = vsub.s32 16777215, %v240_v37  ;;  %v1690_v37 = vld [vmem:[#allocation2] sm:$0xf] }
 0x17c   :  { %v306_v16 = vshll.u32 %v256_v57, 7 }
 0x17d   :  { %v179_v36 = vpop.f32.mrf.mxu2 }
 0x17e   :  { %v209_v7 = vmax.f32 %v179_v36, 0.0  ;;  %v301_v36 = vshll.u32 %v251_v19, 7  ;;  %v1676_v19 = vadd.s32 88, %v1572_v48 }
 0x180   :  { %v241_v22 = vshra.s32 %v209_v7, 7  ;;  %v1653_v61 = vor.u32 %v2909_v20, %v301_v36  ;;  %v1666_v7 = vadd.s32 104, %v1572_v48  ;;  %v2899_v50 = vsub.s32 127, %v1676_v19 }
 0x181   :  { %v766_v38 = vpop.trf.xlu0 }
 0x182   :  { %1416 = vmatmul.msk.f32.gmra.mxu3 %vm86_vm0, %v766_v38  ;;  %v257_v38 = vsub.s32 16777215, %v241_v22  ;;  %v2897_v36 = vsub.s32 127, %v1666_v7 }
 0x185   :  { %v1569_v39 = vpop.f32.mrf.mxu2 }
 0x186   :  { %v210_v35 = vmax.f32 %v1569_v39, 0.0  ;;  %v304_v39 = vshll.u32 %v254_v29, 7 }
 0x188   :  { %v242_v53 = vshra.s32 %v210_v35, 7  ;;  %v1660_v3 = vor.u32 %v2910_v47, %v304_v39  ;;  %v2900_v35 = vsub.s32 127, %v1663_v5 }
 0x189   :  { %v767_v43 = vpop.trf.xlu0 }
 0x18a   :  { %1417 = vmatmul.msk.f32.gmra.mxu3 %vm86_vm0, %v767_v43  ;;  %v258_v13 = vsub.s32 16777215, %v242_v53  ;;  %v358_v31 = vsel %vm2906_vm2, %v1660_v3, 2147483648  ;;  %v2898_v53 = vsub.s32 127, %v1679_v21 }
 0x18b   :  { %vm359_vm5 = vcmp.gt.s32.totalorder %v1639_v46, %v358_v31 }
 0x18d   :  { %v1574_v49 = vpop.f32.mrf.mxu2 }
 0x18e   :  { %v211_v43 = vmax.f32 %v1574_v49, 0.0  ;;  %v2908_v49 = vsub.s32 127, %v1626_v34 }
 0x190   :  { %v243_v0 = vshra.s32 %v211_v43, 7  ;;  %v1686_v33 = vor.u32 %v2908_v49, %v305_v4 }
 0x191   :  { %v768_v58 = vpop.trf.xlu0 }
 0x192   :  { %1418 = vmatmul.msk.f32.gmra.mxu3 %vm86_vm0, %v768_v58  ;;  %v307_v58 = vshll.u32 %v257_v38, 7  ;;  %v308_v38 = vshll.u32 %v258_v13, 7  ;;  %v361_v4 = vsel %vm2906_vm2, %v1686_v33, 2147483648  ;;  %v357_v13 = vsel %vm356_vm3, %v1623_v32, %v355_v63 }
 0x194   :  { %v1673_v18 = vor.u32 %v2901_v59, %v307_v58 }
 0x195   :  { %v188_v8 = vpop.f32.mrf.mxu2 }
 0x196   :  { %v212_v44 = vmax.f32 %v188_v8, 0.0  ;;  %v352_v8 = vsel %vm2906_vm2, %v1644_v51, 2147483648  ;;  %v367_v39 = vsel %vm2906_vm2, %v1673_v18, 2147483648 }
 0x197   :  { %vm353_vm4 = vcmp.gt.s32.totalorder %v1609_v24, %v352_v8  ;;  %vm368_vm6 = vcmp.gt.s32.totalorder %v357_v13, %v367_v39 }
 0x198   :  { %v244_v1 = vshra.s32 %v212_v44, 7  ;;  %v1693_v44 = vadd.s32 112, %v1572_v48 }
 0x199   :  { %v769_v23 = vpop.trf.xlu0 }
 0x19a   :  { %1419 = vmatmul.msk.f32.gmra.mxu3 %vm86_vm0, %v769_v23  ;;  %v259_v23 = vsub.s32 16777215, %v243_v0  ;;  %v260_v26 = vsub.s32 16777215, %v244_v1  ;;  %v404_v0 = vsel %vm2905_vm1, %v1690_v37, 2147483648  ;;  %v351_v1 = vsel %vm2906_vm2, %v1653_v61, 2147483648 }
 0x19b   :  { %vm362_vm7 = vcmp.gt.s32.totalorder %v351_v1, %v361_v4 }
 0x19c   :  { %v309_v57 = vshll.u32 %v259_v23, 7  ;;  %v310_v58 = vshll.u32 %v260_v26, 7  ;;  %v2902_v23 = vsub.s32 127, %v1693_v44  ;;  %v363_v59 = vsel %vm362_vm7, %v351_v1, %v361_v4 }
 0x19d   :  { %v191_v41 = vpop.f32.mrf.mxu2 }
 0x19e   :  { %v213_v45 = vmax.f32 %v191_v41, 0.0  ;;  %v1728_v32 = vor.u32 %v2899_v50, %v309_v57  ;;  %v1732_v63 = vor.u32 %v2898_v53, %v310_v58  ;;  %v369_v53 = vsel %vm368_vm6, %v357_v13, %v367_v39 }
 0x1a0   :  { %v245_v55 = vshra.s32 %v213_v45, 7  ;;  %v1697_v45 = vor.u32 %v2903_v11, %v306_v16 }
 0x1a1   :  { %v770_v60 = vpop.trf.xlu0 }
 0x1a2   :  { %1420 = vmatmul.msk.f32.gmra.mxu3 %vm86_vm0, %v770_v60  ;;  %v261_v15 = vsub.s32 16777215, %v245_v55  ;;  %v364_v26 = vsel %vm2906_vm2, %v1697_v45, 2147483648 }
 0x1a4   :  { %v311_v41 = vshll.u32 %v261_v15, 7  ;;  %v1716_v15 = vor.u32 %v2900_v35, %v308_v38 }
 0x1a5   :  { %v194_v22 = vpop.f32.mrf.mxu2 }
 0x1a6   :  { %v214_v29 = vmax.f32 %v194_v22, 0.0  ;;  %v1720_v16 = vor.u32 %v2897_v36, %v311_v41  ;;  %v1735_v41 = vadd.s32 120, %v1572_v48 }
 0x1a8   :  { %v246_v43 = vshra.s32 %v214_v29, 7  ;;  %v379_v57 = vsel %vm2906_vm2, %v1720_v16, 2147483648  ;;  %v2907_v35 = vsub.s32 127, %v1735_v41 }
 0x1a9   :  { %v771_v55 = vpop.trf.xlu0  ;;  %vm380_vm11 = vcmp.gt.s32.totalorder %v369_v53, %v379_v57 }
 0x1aa   :  { %v262_v60 = vsub.s32 16777215, %v246_v43  ;;  %1421 = vmatmul.msk.f32.gmra.mxu3 %vm86_vm0, %v771_v55  ;;  %v405_v43 = vrot.slane %v404_v0, 4  ;;  %v354_v55 = vsel %vm353_vm4, %v1609_v24, %v352_v8  ;;  %v373_v24 = vsel %vm2906_vm2, %v1728_v32, 2147483648 }
 0x1ab   :  { %vm365_vm8 = vcmp.gt.s32.totalorder %v354_v55, %v364_v26  ;;  %v376_v8 = vsel %vm2906_vm2, %v1732_v63, 2147483648  ;;  %vm374_vm12 = vcmp.gt.s32.totalorder %v363_v59, %v373_v24  ;;  %v381_v13 = vsel %vm380_vm11, %v369_v53, %v379_v57 }
 0x1ac   :  { %v312_v22 = vshll.u32 %v262_v60, 7  ;;  %v370_v60 = vsel %vm2906_vm2, %v1716_v15, 2147483648  ;;  %vm406_vm9 = vcmp.gt.s32.totalorder %v404_v0, %v405_v43  ;;  %v375_v11 = vsel %vm374_vm12, %v363_v59, %v373_v24 }
 0x1ad   :  { %v197_v29 = vpop.f32.mrf.mxu2  ;;  %v407_v39 = vsel %vm406_vm9, %v404_v0, %v405_v43 }
 0x1ae   :  { %v215_v38 = vmax.f32 %v197_v29, 0.0  ;;  %v1746_v36 = vor.u32 %v2902_v23, %v312_v22  ;;  %v360_v29 = vsel %vm359_vm5, %v1639_v46, %v358_v31  ;;  %v408_v1 = vrot.slane %v407_v39, 2 }
 0x1af   :  { %vm371_vm10 = vcmp.gt.s32.totalorder %v360_v29, %v370_v60  ;;  %v1756_v22 = vpop.f32.mrf.mxu1 }
 0x1b0   :  { %v247_v58 = vshra.s32 %v215_v38, 7  ;;  %v366_v38 = vsel %vm365_vm8, %v354_v55, %v364_v26  ;;  %v382_v46 = vsel %vm2906_vm2, %v1746_v36, 2147483648  ;;  %v372_v23 = vsel %vm371_vm10, %v360_v29, %v370_v60 }
 0x1b1   :  { %vm377_vm13 = vcmp.gt.s32.totalorder %v366_v38, %v376_v8  ;;  %vm383_vm14 = vcmp.gt.s32.totalorder %v372_v23, %v382_v46  ;;  %vm409_vm4 = vcmp.gt.s32.totalorder %v407_v39, %v408_v1  ;;  %vm2904_vm10 = vcmask 516096  }
 0x1b2   :  { %v263_v50 = vsub.s32 16777215, %v247_v58  ;;  %v378_v4 = vsel %vm377_vm13, %v366_v38, %v376_v8  ;;  %v384_v55 = vsel %vm383_vm14, %v372_v23, %v382_v46  ;;  %v410_v57 = vsel %vm409_vm4, %v407_v39, %v408_v1 }
 0x1b3   :  { %vm388_vm15 = vcmp.gt.s32.totalorder %v378_v4, %v381_v13  ;;  %v411_v8 = vrot.slane %v410_v57, 1  ;;  %v885_v39 = vmax.f32 %v1756_v22, 0.0 }
 0x1b4   :  { %v313_v31 = vshll.u32 %v263_v50, 7  ;;  %v389_v53 = vsel %vm388_vm15, %v378_v4, %v381_v13 }
 0x1b5   :  { %vm412_vm8 = vcmp.gt.s32.totalorder %v410_v57, %v411_v8  ;;  %v917_v20 = vshra.s32 %v885_v39, 7 }
 0x1b6   :  { %v1762_v58 = vor.u32 %v2907_v35, %v313_v31  ;;  %v413_v46 = vsel %vm412_vm8, %v410_v57, %v411_v8 }
 0x1b7   :  { %v1766_v0 = vpop.f32.mrf.mxu1 }
 0x1b8   :  { %v385_v26 = vsel %vm2906_vm2, %v1762_v58, 2147483648 }
 0x1b9   :  { %vm386_vm0 = vcmp.gt.s32.totalorder %v375_v11, %v385_v26 }
 0x1ba   :  { %v387_v50 = vsel %vm386_vm0, %v375_v11, %v385_v26 }
 0x1bb   :  { %vm390_vm3 = vcmp.gt.s32.totalorder %v384_v55, %v387_v50 }
 0x1bc   :  { %v391_v43 = vsel %vm390_vm3, %v384_v55, %v387_v50 }
 0x1bd   :  { %vm392_vm5 = vcmp.gt.s32.totalorder %v389_v53, %v391_v43 }
 0x1be   :  { %v393_v60 = vsel %vm392_vm5, %v389_v53, %v391_v43 }
 0x1bf   :  { %v394_v29 = vrot.slane %v393_v60, 4  ;;  %v1768_v38 = vpop.f32.mrf.mxu1 }
 0x1c1   :  { %vm395_vm6 = vcmp.gt.s32.totalorder %v393_v60, %v394_v29 }
 0x1c2   :  { %v396_v59 = vsel %vm395_vm6, %v393_v60, %v394_v29 }
 0x1c3   :  { %v397_v24 = vrot.slane %v396_v59, 2 }
 0x1c5   :  { %vm398_vm7 = vcmp.gt.s32.totalorder %v396_v59, %v397_v24 }
 0x1c6   :  { %v399_v23 = vsel %vm398_vm7, %v396_v59, %v397_v24 }
 0x1c7   :  { %v400_v11 = vrot.slane %v399_v23, 1  ;;  %v1770_v13 = vpop.f32.mrf.mxu1 }
 0x1c9   :  { %vm401_vm9 = vcmp.gt.s32.totalorder %v399_v23, %v400_v11 }
 0x1ca   :  { %v402_v31 = vsel %vm401_vm9, %v399_v23, %v400_v11 }
 0x1cb   :  { %vm414_vm11 = vcmp.gt.s32.totalorder %v402_v31, %v413_v46 }
 0x1cc   :  { %v1772_v4 = vsel %vm414_vm11, %v402_v31, %v413_v46 }
 0x1cd   :  { %417 = vst.msk [vmem:[#allocation2] sm:$0x1] %vm2904_vm10, %v1772_v4  ;;  %vm421_vm12 = vcmp.lt.s32.totalorder %v1592_v9, %v1772_v4  ;;  %vm422_vm13 = vcmp.lt.s32.totalorder %v1603_v17, %v1772_v4  ;;  %vm423_vm14 = vcmp.lt.s32.totalorder %v1616_v28, %v1772_v4  ;;  %vm424_vm15 = vcmp.lt.s32.totalorder %v1653_v61, %v1772_v4 }
 0x1ce   :  { %vm425_vm0 = vcmp.lt.s32.totalorder %v1644_v51, %v1772_v4  ;;  %vm426_vm3 = vcmp.lt.s32.totalorder %v1634_v42, %v1772_v4  ;;  %vm427_vm4 = vcmp.lt.s32.totalorder %v1660_v3, %v1772_v4  ;;  %vm428_vm5 = vcmp.lt.s32.totalorder %v1686_v33, %v1772_v4 }
 0x1cf   :  { %vm429_vm6 = vcmp.lt.s32.totalorder %v1697_v45, %v1772_v4  ;;  %vm430_vm7 = vcmp.lt.s32.totalorder %v1673_v18, %v1772_v4  ;;  %vm431_vm8 = vcmp.lt.s32.totalorder %v1716_v15, %v1772_v4  ;;  %vm432_vm9 = vcmp.lt.s32.totalorder %v1728_v32, %v1772_v4 }
 0x1d0   :  { %vm433_vm11 = vcmp.lt.s32.totalorder %v1732_v63, %v1772_v4  ;;  %vm434_vm10 = vcmp.lt.s32.totalorder %v1720_v16, %v1772_v4  ;;  %vm435_vm1 = vcmp.lt.s32.totalorder %v1746_v36, %v1772_v4  ;;  %vm436_vm2 = vcmp.lt.s32.totalorder %v1762_v58, %v1772_v4 }
 0x1d1   :  { %v1813_v1 = vsel %vm421_vm12, %v1592_v9, 4294967295  ;;  %v1819_v26 = vsel %vm422_vm13, %v1603_v17, 4294967295  ;;  %v1825_v55 = vsel %vm423_vm14, %v1616_v28, 4294967295  ;;  %v1831_v50 = vsel %vm424_vm15, %v1653_v61, 4294967295 }
 0x1d2   :  { %v1837_v9 = vsel %vm425_vm0, %v1644_v51, 4294967295  ;;  %v1843_v17 = vsel %vm426_vm3, %v1634_v42, 4294967295  ;;  %v1849_v28 = vsel %vm427_vm4, %v1660_v3, 4294967295  ;;  %v1855_v61 = vsel %vm428_vm5, %v1686_v33, 4294967295 }
 0x1d3   :  { %v1861_v51 = vsel %vm429_vm6, %v1697_v45, 4294967295  ;;  %v1867_v42 = vsel %vm430_vm7, %v1673_v18, 4294967295  ;;  %v1873_v3 = vsel %vm431_vm8, %v1716_v15, 4294967295  ;;  %v1879_v33 = vsel %vm432_vm9, %v1728_v32, 4294967295  ;;  %v1881_v45 = vpop.f32.mrf.mxu1 }
 0x1d4   :  { %v1887_v18 = vsel %vm433_vm11, %v1732_v63, 4294967295  ;;  %v1893_v15 = vsel %vm434_vm10, %v1720_v16, 4294967295  ;;  %v1899_v32 = vsel %vm435_vm1, %v1746_v36, 4294967295  ;;  %v1905_v53 = vsel %vm436_vm2, %v1762_v58, 4294967295 }
 0x1d5   :  { %vm453_vm12 = vcmp.lt.s32.totalorder %v1690_v37, %v1772_v4  ;;  %vm2913_vm13 = vcmask 523264  }
 0x1d6   :  { %v455_v63 = vsel %vm2913_vm13, %v1813_v1, 2147483648  ;;  %vm2914_vm10 = vmmov %vm2913_vm13  ;;  %v1916_v36 = vsel %vm453_vm12, %v1690_v37, 4294967295 }
 0x1d7   :  { %v456_v16 = vsel %vm2914_vm10, %v1819_v26, 2147483648  ;;  %vm2915_vm14 = vmmov %vm2914_vm10 }
 0x1d8   :  { %v457_v43 = vsel %vm2915_vm14, %v1825_v55, 2147483648  ;;  %vm2916_vm1 = vmmov %vm2914_vm10 }
 0x1d9   :  { %v458_v60 = vsel %vm2916_vm1, %v1831_v50, 2147483648  ;;  %vm2917_vm2 = vmmov %vm2916_vm1 }
 0x1da   :  { %v459_v58 = vsel %vm2917_vm2, %v1837_v9, 2147483648  ;;  %vm2918_vm15 = vmmov %vm2916_vm1 }
 0x1db   :  { %v462_v57 = vsel %vm2918_vm15, %v1843_v17, 2147483648  ;;  %vm460_vm0 = vcmp.gt.s32.totalorder %v455_v63, %v459_v58  ;;  %vm2919_vm4 = vmmov %vm2916_vm1 }
 0x1dc   :  { %vm463_vm3 = vcmp.gt.s32.totalorder %v456_v16, %v462_v57  ;;  %v465_v29 = vsel %vm2919_vm4, %v1849_v28, 2147483648  ;;  %vm2920_vm5 = vmmov %vm2916_vm1  ;;  %v461_v59 = vsel %vm460_vm0, %v455_v63, %v459_v58 }
 0x1dd   :  { %v468_v8 = vsel %vm2920_vm5, %v1855_v61, 2147483648  ;;  %v464_v37 = vsel %vm463_vm3, %v456_v16, %v462_v57  ;;  %vm466_vm6 = vcmp.gt.s32.totalorder %v457_v43, %v465_v29  ;;  %vm2921_vm8 = vmmov %vm2916_vm1  ;;  %v483_v57 = vsel %vm2917_vm2, %v1887_v18, 2147483648 }
 0x1de   :  { %vm469_vm7 = vcmp.gt.s32.totalorder %v458_v60, %v468_v8  ;;  %v467_v24 = vsel %vm466_vm6, %v457_v43, %v465_v29  ;;  %v471_v11 = vsel %vm2921_vm8, %v1861_v51, 2147483648  ;;  %vm2922_vm9 = vmmov %vm2916_vm1  ;;  %v852_v43 = vpop.f32.mrf.mxu1 }
 0x1df   :  { %v470_v23 = vsel %vm469_vm7, %v458_v60, %v468_v8  ;;  %v474_v46 = vsel %vm2922_vm9, %v1867_v42, 2147483648  ;;  %vm472_vm11 = vcmp.gt.s32.totalorder %v461_v59, %v471_v11  ;;  %vm2923_vm13 = vmmov %vm2916_vm1  ;;  %vm2928_vm9 = vcmask 519168  }
 0x1e0   :  { %vm475_vm12 = vcmp.gt.s32.totalorder %v464_v37, %v474_v46  ;;  %v477_v31 = vsel %vm2923_vm13, %v1873_v3, 2147483648  ;;  %vm2924_vm10 = vmmov %vm2916_vm1  ;;  %v473_v63 = vsel %vm472_vm11, %v461_v59, %v471_v11 }
 0x1e1   :  { %v480_v35 = vsel %vm2924_vm10, %v1879_v33, 2147483648  ;;  %v476_v16 = vsel %vm475_vm12, %v464_v37, %v474_v46  ;;  %vm478_vm14 = vcmp.gt.s32.totalorder %v467_v24, %v477_v31  ;;  %vm2925_vm15 = vmmov %vm2917_vm2  ;;  %vm484_vm0 = vcmp.gt.s32.totalorder %v473_v63, %v483_v57 }
 0x1e2   :  { %vm481_vm1 = vcmp.gt.s32.totalorder %v470_v23, %v480_v35  ;;  %v479_v60 = vsel %vm478_vm14, %v467_v24, %v477_v31  ;;  %v486_v29 = vsel %vm2925_vm15, %v1893_v15, 2147483648  ;;  %vm2926_vm4 = vmmov %vm2917_vm2  ;;  %v485_v37 = vsel %vm484_vm0, %v473_v63, %v483_v57 }
 0x1e3   :  { %v482_v58 = vsel %vm481_vm1, %v470_v23, %v480_v35  ;;  %vm487_vm3 = vcmp.gt.s32.totalorder %v476_v16, %v486_v29  ;;  %v489_v8 = vsel %vm2926_vm4, %v1899_v32, 2147483648  ;;  %vm2927_vm5 = vmmov %vm2917_vm2  ;;  %v510_v23 = vsel %vm2928_vm9, %v1916_v36, 2147483648 }
 0x1e4   :  { %v492_v59 = vsel %vm2927_vm5, %v1905_v53, 2147483648  ;;  %v488_v11 = vsel %vm487_vm3, %v476_v16, %v486_v29  ;;  %vm490_vm6 = vcmp.gt.s32.totalorder %v479_v60, %v489_v8  ;;  %v511_v31 = vrot.slane %v510_v23, 4 }
 0x1e5   :  { %vm493_vm7 = vcmp.gt.s32.totalorder %v482_v58, %v492_v59  ;;  %v491_v24 = vsel %vm490_vm6, %v479_v60, %v489_v8  ;;  %vm495_vm8 = vcmp.gt.s32.totalorder %v485_v37, %v488_v11  ;;  %v418_v63 = vand.u32 127, %v1772_v4 }
 0x1e6   :  { %v494_v35 = vsel %vm493_vm7, %v482_v58, %v492_v59  ;;  %v496_v46 = vsel %vm495_vm8, %v485_v37, %v488_v11  ;;  %vm512_vm13 = vcmp.gt.s32.totalorder %v510_v23, %v511_v31  ;;  %v886_v60 = vmax.f32 %v1766_v0, 0.0  ;;  %v855_v29 = vpop.f32.mrf.mxu1 }
 0x1e7   :  { %vm497_vm11 = vcmp.gt.s32.totalorder %v491_v24, %v494_v35  ;;  %v513_v57 = vsel %vm512_vm13, %v510_v23, %v511_v31  ;;  %v887_v58 = vmax.f32 %v1768_v38, 0.0  ;;  %v889_v37 = vmax.f32 %v1881_v45, 0.0 }
 0x1e8   :  { %v498_v49 = vsel %vm497_vm11, %v491_v24, %v494_v35  ;;  %v514_v59 = vrot.slane %v513_v57, 2  ;;  %v890_v11 = vmax.f32 %v852_v43, 0.0  ;;  %v419_v24 = vsub.s32 127, %v418_v63 }
 0x1e9   :  { %vm499_vm12 = vcmp.gt.s32.totalorder %v496_v46, %v498_v49  ;;  %v933_v35 = vsub.s32 16777215, %v917_v20  ;;  %v918_v47 = vshra.s32 %v886_v60, 7  ;;  %v919_v4 = vshra.s32 %v887_v58, 7 }
 0x1ea   :  { %v500_v16 = vsel %vm499_vm12, %v496_v46, %v498_v49  ;;  %vm515_vm14 = vcmp.gt.s32.totalorder %v513_v57, %v514_v59  ;;  %vm2929_vm1 = vcmask 516096   ;;  %v888_v38 = vmax.f32 %v1770_v13, 0.0 }
 0x1eb   :  { %v501_v8 = vrot.slane %v500_v16, 4  ;;  %v516_v39 = vsel %vm515_vm14, %v513_v57, %v514_v59  ;;  %420 = vst.msk [vmem:[#allocation8] sm:$0x1] %vm2929_vm1, %v419_v24  ;;  %v921_v23 = vshra.s32 %v889_v37, 7  ;;  %v922_v46 = vshra.s32 %v890_v11, 7  ;;  %vm2930_vm4 = vmmov %vm2929_vm1 }
 0x1ec   :  { %v517_v0 = vrot.slane %v516_v39, 1  ;;  %v891_v31 = vmax.f32 %v855_v29, 0.0  ;;  %v949_v43 = vshll.u32 %v933_v35, 7  ;;  %v934_v63 = vsub.s32 16777215, %v918_v47 }
 0x1ed   :  { %vm502_vm10 = vcmp.gt.s32.totalorder %v500_v16, %v501_v8  ;;  %v935_v14 = vsub.s32 16777215, %v919_v4  ;;  %v937_v57 = vsub.s32 16777215, %v921_v23  ;;  %v938_v60 = vsub.s32 16777215, %v922_v46 }
 0x1ee   :  { %v503_v22 = vsel %vm502_vm10, %v500_v16, %v501_v8  ;;  %v858_v2 = vpop.f32.mrf.mxu1  ;;  %vm518_vm15 = vcmp.gt.s32.totalorder %v516_v39, %v517_v0  ;;  %v1954_v16 = vshra.s32 %v888_v38, 7  ;;  %v1956_v58 = vshra.s32 %v891_v31, 7 }
 0x1ef   :  { %v504_v49 = vrot.slane %v503_v22, 2  ;;  %v892_v8 = vmax.f32 %v858_v2, 0.0  ;;  %v519_v59 = vsel %vm518_vm15, %v516_v39, %v517_v0  ;;  %v1960_v29 = vor.u32 %v949_v43, %v314_v56 }
 0x1f0   :  { %v1962_v37 = vshll.u32 %v934_v63, 7  ;;  %v1964_v47 = vshll.u32 %v935_v14, 7  ;;  %v1967_v24 = vshll.u32 %v937_v57, 7  ;;  %v939_v2 = vsub.s32 16777215, %v1956_v58 }
 0x1f1   :  { %vm505_vm2 = vcmp.gt.s32.totalorder %v503_v22, %v504_v49  ;;  %v1974_v39 = vshra.s32 %v892_v8, 7 }
 0x1f2   :  { %v506_v45 = vsel %vm505_vm2, %v503_v22, %v504_v49  ;;  %v1971_v22 = vshll.u32 %v938_v60, 7 }
 0x1f3   :  { %v507_v20 = vrot.slane %v506_v45, 1 }
 0x1f5   :  { %vm508_vm0 = vcmp.gt.s32.totalorder %v506_v45, %v507_v20 }
 0x1f6   :  { %v509_v13 = vsel %vm508_vm0, %v506_v45, %v507_v20 }
 0x1f7   :  { %vm520_vm3 = vcmp.gt.s32.totalorder %v509_v13, %v519_v59 }
 0x1f8   :  { %v1969_v35 = vsel %vm520_vm3, %v509_v13, %v519_v59 }
 0x1f9   :  { %522 = vst.msk [vmem:[#allocation2 + $0x1] sm:$0x1] %vm2930_vm4, %v1969_v35  ;;  %vm526_vm5 = vcmp.lt.s32.totalorder %v1813_v1, %v1969_v35  ;;  %vm527_vm6 = vcmp.lt.s32.totalorder %v1819_v26, %v1969_v35  ;;  %vm528_vm7 = vcmp.lt.s32.totalorder %v1825_v55, %v1969_v35  ;;  %vm529_vm8 = vcmp.lt.s32.totalorder %v1831_v50, %v1969_v35 }
 0x1fa   :  { %vm530_vm9 = vcmp.lt.s32.totalorder %v1837_v9, %v1969_v35  ;;  %vm531_vm11 = vcmp.lt.s32.totalorder %v1843_v17, %v1969_v35  ;;  %vm532_vm12 = vcmp.lt.s32.totalorder %v1849_v28, %v1969_v35  ;;  %vm533_vm13 = vcmp.lt.s32.totalorder %v1855_v61, %v1969_v35 }
 0x1fb   :  { %vm534_vm10 = vcmp.lt.s32.totalorder %v1861_v51, %v1969_v35  ;;  %vm535_vm14 = vcmp.lt.s32.totalorder %v1867_v42, %v1969_v35  ;;  %vm536_vm1 = vcmp.lt.s32.totalorder %v1873_v3, %v1969_v35  ;;  %vm537_vm2 = vcmp.lt.s32.totalorder %v1879_v33, %v1969_v35 }
 0x1fc   :  { %vm538_vm15 = vcmp.lt.s32.totalorder %v1887_v18, %v1969_v35  ;;  %vm539_vm0 = vcmp.lt.s32.totalorder %v1893_v15, %v1969_v35  ;;  %vm540_vm3 = vcmp.lt.s32.totalorder %v1899_v32, %v1969_v35  ;;  %vm541_vm4 = vcmp.lt.s32.totalorder %v1905_v53, %v1969_v35 }
 0x1fd   :  { %v2014_v48 = vsel %vm526_vm5, %v1813_v1, 4294967295  ;;  %v2020_v56 = vsel %vm527_vm6, %v1819_v26, 4294967295  ;;  %v2026_v14 = vsel %vm528_vm7, %v1825_v55, 4294967295  ;;  %v2032_v4 = vsel %vm529_vm8, %v1831_v50, 4294967295 }
 0x1fe   :  { %v2038_v1 = vsel %vm530_vm9, %v1837_v9, 4294967295  ;;  %v2044_v26 = vsel %vm531_vm11, %v1843_v17, 4294967295  ;;  %v2050_v55 = vsel %vm532_vm12, %v1849_v28, 4294967295  ;;  %v2056_v50 = vsel %vm533_vm13, %v1855_v61, 4294967295 }
 0x1ff   :  { %v2062_v9 = vsel %vm534_vm10, %v1861_v51, 4294967295  ;;  %v2068_v17 = vsel %vm535_vm14, %v1867_v42, 4294967295  ;;  %v2074_v28 = vsel %vm536_vm1, %v1873_v3, 4294967295  ;;  %v2080_v61 = vsel %vm537_vm2, %v1879_v33, 4294967295 }
 0x200   :  { %v2086_v51 = vsel %vm538_vm15, %v1887_v18, 4294967295  ;;  %v2092_v42 = vsel %vm539_vm0, %v1893_v15, 4294967295  ;;  %v2098_v3 = vsel %vm540_vm3, %v1899_v32, 4294967295  ;;  %v2104_v33 = vsel %vm541_vm4, %v1905_v53, 4294967295  ;;  %v861_v18 = vpop.f32.mrf.mxu3 }
 0x201   :  { %vm558_vm5 = vcmp.lt.s32.totalorder %v1916_v36, %v1969_v35  ;;  %vm2931_vm6 = vcmask 523264   ;;  %v893_v11 = vmax.f32 %v861_v18, 0.0 }
 0x202   :  { %v560_v15 = vsel %vm2931_vm6, %v2014_v48, 2147483648  ;;  %vm2932_vm7 = vmmov %vm2931_vm6  ;;  %v2115_v0 = vsel %vm558_vm5, %v1916_v36, 4294967295 }
 0x203   :  { %v561_v49 = vsel %vm2932_vm7, %v2020_v56, 2147483648  ;;  %vm2933_vm8 = vmmov %vm2931_vm6 }
 0x204   :  { %v562_v32 = vsel %vm2933_vm8, %v2026_v14, 2147483648  ;;  %vm2934_vm9 = vmmov %vm2931_vm6 }
 0x205   :  { %v563_v53 = vsel %vm2934_vm9, %v2032_v4, 2147483648  ;;  %vm2935_vm11 = vmmov %vm2931_vm6 }
 0x206   :  { %v564_v38 = vsel %vm2935_vm11, %v2038_v1, 2147483648  ;;  %vm2936_vm12 = vmmov %vm2931_vm6 }
 0x207   :  { %v567_v23 = vsel %vm2936_vm12, %v2044_v26, 2147483648  ;;  %vm565_vm13 = vcmp.gt.s32.totalorder %v560_v15, %v564_v38  ;;  %vm2937_vm14 = vmmov %vm2931_vm6 }
 0x208   :  { %vm568_vm10 = vcmp.gt.s32.totalorder %v561_v49, %v567_v23  ;;  %v570_v46 = vsel %vm2937_vm14, %v2050_v55, 2147483648  ;;  %vm2938_vm1 = vmmov %vm2931_vm6  ;;  %v566_v45 = vsel %vm565_vm13, %v560_v15, %v564_v38  ;;  %v864_v38 = vpop.f32.mrf.mxu3 }
 0x209   :  { %v573_v31 = vsel %vm2938_vm1, %v2056_v50, 2147483648  ;;  %v569_v36 = vsel %vm568_vm10, %v561_v49, %v567_v23  ;;  %vm571_vm2 = vcmp.gt.s32.totalorder %v562_v32, %v570_v46  ;;  %vm2939_vm0 = vmmov %vm2938_vm1 }
 0x20a   :  { %vm574_vm15 = vcmp.gt.s32.totalorder %v563_v53, %v573_v31  ;;  %v572_v43 = vsel %vm571_vm2, %v562_v32, %v570_v46  ;;  %v576_v20 = vsel %vm2939_vm0, %v2062_v9, 2147483648  ;;  %vm2940_vm3 = vmmov %vm2939_vm0 }
 0x20b   :  { %v575_v63 = vsel %vm574_vm15, %v563_v53, %v573_v31  ;;  %v579_v57 = vsel %vm2940_vm3, %v2068_v17, 2147483648  ;;  %vm577_vm4 = vcmp.gt.s32.totalorder %v566_v45, %v576_v20  ;;  %vm2941_vm6 = vmmov %vm2939_vm0  ;;  %vm2947_vm3 = vcmask 519168  }
 0x20c   :  { %vm580_vm5 = vcmp.gt.s32.totalorder %v569_v36, %v579_v57  ;;  %v582_v60 = vsel %vm2941_vm6, %v2074_v28, 2147483648  ;;  %vm2942_vm7 = vmmov %vm2939_vm0  ;;  %v578_v13 = vsel %vm577_vm4, %v566_v45, %v576_v20 }
 0x20d   :  { %v585_v8 = vsel %vm2942_vm7, %v2080_v61, 2147483648  ;;  %v581_v59 = vsel %vm580_vm5, %v569_v36, %v579_v57  ;;  %vm583_vm8 = vcmp.gt.s32.totalorder %v572_v43, %v582_v60  ;;  %vm2943_vm11 = vmmov %vm2939_vm0 }
 0x20e   :  { %vm586_vm9 = vcmp.gt.s32.totalorder %v575_v63, %v585_v8  ;;  %v584_v15 = vsel %vm583_vm8, %v572_v43, %v582_v60  ;;  %v588_v32 = vsel %vm2943_vm11, %v2086_v51, 2147483648  ;;  %vm2944_vm12 = vmmov %vm2939_vm0  ;;  %v2148_v60 = vor.u32 %v1967_v24, %v318_v25 }
 0x20f   :  { %v587_v49 = vsel %vm586_vm9, %v575_v63, %v585_v8  ;;  %v591_v53 = vsel %vm2944_vm12, %v2092_v42, 2147483648  ;;  %vm589_vm13 = vcmp.gt.s32.totalorder %v578_v13, %v588_v32  ;;  %vm2945_vm14 = vmmov %vm2939_vm0  ;;  %v615_v63 = vsel %vm2947_vm3, %v2115_v0, 2147483648 }
 0x210   :  { %vm592_vm10 = vcmp.gt.s32.totalorder %v581_v59, %v591_v53  ;;  %v594_v23 = vsel %vm2945_vm14, %v2098_v3, 2147483648  ;;  %vm2946_vm1 = vmmov %vm2939_vm0  ;;  %v590_v31 = vsel %vm589_vm13, %v578_v13, %v588_v32  ;;  %v616_v57 = vrot.slane %v615_v63, 4 }
 0x211   :  { %v597_v46 = vsel %vm2946_vm1, %v2104_v33, 2147483648  ;;  %v593_v45 = vsel %vm592_vm10, %v581_v59, %v591_v53  ;;  %vm595_vm2 = vcmp.gt.s32.totalorder %v584_v15, %v594_v23  ;;  %v894_v13 = vmax.f32 %v864_v38, 0.0  ;;  %vm2953_vm11 = vmmov %vm2946_vm1 }
 0x212   :  { %vm598_vm15 = vcmp.gt.s32.totalorder %v587_v49, %v597_v46  ;;  %v596_v36 = vsel %vm595_vm2, %v584_v15, %v594_v23  ;;  %vm600_vm0 = vcmp.gt.s32.totalorder %v590_v31, %v593_v45  ;;  %v523_v59 = vand.u32 127, %v1969_v35  ;;  %v867_v23 = vpop.f32.mrf.mxu3  ;;  %vm2954_vm12 = vmmov %vm2946_vm1 }
 0x213   :  { %v599_v43 = vsel %vm598_vm15, %v587_v49, %v597_v46  ;;  %v601_v20 = vsel %vm600_vm0, %v590_v31, %v593_v45  ;;  %vm617_vm6 = vcmp.gt.s32.totalorder %v615_v63, %v616_v57  ;;  %v2154_v15 = vor.u32 %v1971_v22, %v319_v27  ;;  %vm2955_vm13 = vmmov %vm2946_vm1 }
 0x214   :  { %vm602_vm4 = vcmp.gt.s32.totalorder %v596_v36, %v599_v43  ;;  %v955_v49 = vshll.u32 %v939_v2, 7  ;;  %v618_v10 = vsel %vm617_vm6, %v615_v63, %v616_v57  ;;  %v940_v25 = vsub.s32 16777215, %v1974_v39  ;;  %vm2956_vm14 = vmmov %vm2946_vm1 }
 0x215   :  { %v603_v8 = vsel %vm602_vm4, %v596_v36, %v599_v43  ;;  %v925_v24 = vshra.s32 %v893_v11, 7  ;;  %v619_v18 = vrot.slane %v618_v10, 2  ;;  %v926_v38 = vshra.s32 %v894_v13, 7  ;;  %vm2958_vm2 = vmmov %vm2946_vm1 }
 0x216   :  { %vm604_vm5 = vcmp.gt.s32.totalorder %v601_v20, %v603_v8  ;;  %v524_v35 = vsub.s32 127, %v523_v59  ;;  %v2948_v46 = vsub.s32 127, %v1577_v54  ;;  %v2949_v27 = vsub.s32 127, %v1582_v62  ;;  %vm2961_vm6 = vmmov %vm2946_vm1 }
 0x217   :  { %v605_v32 = vsel %vm604_vm5, %v601_v20, %v603_v8  ;;  %v941_v22 = vsub.s32 16777215, %v925_v24  ;;  %v895_v2 = vmax.f32 %v867_v23, 0.0  ;;  %vm620_vm8 = vcmp.gt.s32.totalorder %v618_v10, %v619_v18 }
 0x218   :  { %v606_v53 = vrot.slane %v605_v32, 4  ;;  %v2162_v12 = vor.u32 %v1962_v37, %v2948_v46  ;;  %v2167_v58 = vor.u32 %v1964_v47, %v2949_v27  ;;  %v2950_v11 = vsub.s32 16777215, %v1954_v16 }
 0x219   :  { %v2951_v31 = vsub.s32 127, %v1619_v30  ;;  %vm2952_vm9 = vcmask 516096   ;;  %v621_v37 = vsel %vm620_vm8, %v618_v10, %v619_v18  ;;  %v987_v62 = vsel %vm2953_vm11, %v2148_v60, 2147483648  ;;  %vm2962_vm8 = vmmov %vm2946_vm1 }
 0x21a   :  { %vm607_vm7 = vcmp.gt.s32.totalorder %v605_v32, %v606_v53  ;;  %v952_v39 = vshll.u32 %v2950_v11, 7  ;;  %525 = vst.msk [vmem:[#allocation8 + $0x1] sm:$0x1] %vm2952_vm9, %v524_v35  ;;  %v990_v47 = vsel %vm2954_vm12, %v2154_v15, 2147483648  ;;  %v622_v43 = vrot.slane %v621_v37, 1  ;;  %vm2964_vm9 = vmmov %vm2946_vm1 }
 0x21b   :  { %v2173_v45 = vor.u32 %v955_v49, %v2951_v31  ;;  %v608_v54 = vsel %vm607_vm7, %v605_v32, %v606_v53  ;;  %v956_v63 = vshll.u32 %v940_v25, 7  ;;  %v942_v20 = vsub.s32 16777215, %v926_v38  ;;  %v870_v38 = vpop.f32.mrf.mxu3 }
 0x21c   :  { %v609_v36 = vrot.slane %v608_v54, 2  ;;  %v983_v16 = vsel %vm2955_vm13, %v1960_v29, 2147483648  ;;  %v957_v30 = vshll.u32 %v941_v22, 7  ;;  %v927_v57 = vshra.s32 %v895_v2, 7 }
 0x21d   :  { %v984_v8 = vsel %vm2956_vm14, %v2162_v12, 2147483648  ;;  %v2957_v13 = vsub.s32 127, %v1588_v6  ;;  %v993_v49 = vsel %vm2946_vm1, %v2173_v45, 2147483648  ;;  %v985_v10 = vsel %vm2958_vm2, %v2167_v58, 2147483648 }
 0x21e   :  { %vm610_vm10 = vcmp.gt.s32.totalorder %v608_v54, %v609_v36  ;;  %vm988_vm15 = vcmp.gt.s32.totalorder %v983_v16, %v987_v62  ;;  %vm991_vm0 = vcmp.gt.s32.totalorder %v984_v8, %v990_v47  ;;  %vm623_vm3 = vcmp.gt.s32.totalorder %v621_v37, %v622_v43 }
 0x21f   :  { %v2186_v59 = vor.u32 %v952_v39, %v2957_v13  ;;  %v611_v32 = vsel %vm610_vm10, %v608_v54, %v609_v36  ;;  %v2959_v24 = vsub.s32 127, %v1626_v34  ;;  %v958_v18 = vshll.u32 %v942_v20, 7 }
 0x220   :  { %v612_v25 = vrot.slane %v611_v32, 1  ;;  %vm994_vm4 = vcmp.gt.s32.totalorder %v985_v10, %v993_v49  ;;  %v2960_v6 = vsub.s32 127, %v1647_v52  ;;  %v943_v35 = vsub.s32 16777215, %v927_v57 }
 0x221   :  { %v2194_v53 = vor.u32 %v956_v63, %v2959_v24  ;;  %v896_v46 = vmax.f32 %v870_v38, 0.0  ;;  %v2202_v27 = vsel %vm2961_vm6, %v2186_v59, 2147483648  ;;  %v624_v2 = vsel %vm623_vm3, %v621_v37, %v622_v43 }
 0x222   :  { %v2198_v23 = vor.u32 %v957_v30, %v2960_v6  ;;  %vm613_vm5 = vcmp.gt.s32.totalorder %v611_v32, %v612_v25  ;;  %v2204_v11 = vsel %vm988_vm15, %v983_v16, %v987_v62  ;;  %v2206_v34 = vsel %vm991_vm0, %v984_v8, %v990_v47 }
 0x223   :  { %v614_v22 = vsel %vm613_vm5, %v611_v32, %v612_v25  ;;  %v2210_v39 = vsel %vm2962_vm8, %v2194_v53, 2147483648  ;;  %v2963_v52 = vsub.s32 127, %v1630_v40  ;;  %v2216_v54 = vsel %vm994_vm4, %v985_v10, %v993_v49  ;;  %v2254_v40 = vpop.f32.mrf.mxu3 }
 0x224   :  { %vm625_vm7 = vcmp.gt.s32.totalorder %v614_v22, %v624_v2  ;;  %v2222_v37 = vsel %vm2964_vm9, %v2198_v23, 2147483648  ;;  %v2224_v62 = vshll.u32 %v943_v35, 7  ;;  %v2226_v47 = vshra.s32 %v896_v46, 7 }
 0x225   :  { %v2214_v31 = vor.u32 %v958_v18, %v2963_v52  ;;  %v2218_v36 = vsel %vm625_vm7, %v614_v22, %v624_v2  ;;  %vm2965_vm11 = vcmask 516096  }
 0x226   :  { %627 = vst.msk [vmem:[#allocation2 + $0x2] sm:$0x1] %vm2965_vm11, %v2218_v36  ;;  %vm631_vm12 = vcmp.lt.s32.totalorder %v2014_v48, %v2218_v36  ;;  %vm632_vm13 = vcmp.lt.s32.totalorder %v2020_v56, %v2218_v36  ;;  %vm633_vm10 = vcmp.lt.s32.totalorder %v2026_v14, %v2218_v36  ;;  %vm634_vm14 = vcmp.lt.s32.totalorder %v2032_v4, %v2218_v36 }
 0x227   :  { %vm635_vm1 = vcmp.lt.s32.totalorder %v2038_v1, %v2218_v36  ;;  %vm636_vm2 = vcmp.lt.s32.totalorder %v2044_v26, %v2218_v36  ;;  %vm637_vm15 = vcmp.lt.s32.totalorder %v2050_v55, %v2218_v36  ;;  %vm638_vm0 = vcmp.lt.s32.totalorder %v2056_v50, %v2218_v36 }
 0x228   :  { %vm639_vm3 = vcmp.lt.s32.totalorder %v2062_v9, %v2218_v36  ;;  %vm640_vm4 = vcmp.lt.s32.totalorder %v2068_v17, %v2218_v36  ;;  %vm641_vm5 = vcmp.lt.s32.totalorder %v2074_v28, %v2218_v36  ;;  %vm642_vm6 = vcmp.lt.s32.totalorder %v2080_v61, %v2218_v36 }
 0x229   :  { %vm643_vm7 = vcmp.lt.s32.totalorder %v2086_v51, %v2218_v36  ;;  %vm644_vm8 = vcmp.lt.s32.totalorder %v2092_v42, %v2218_v36  ;;  %vm645_vm9 = vcmp.lt.s32.totalorder %v2098_v3, %v2218_v36  ;;  %vm646_vm11 = vcmp.lt.s32.totalorder %v2104_v33, %v2218_v36 }
 0x22a   :  { %v647_v43 = vsel %vm631_vm12, %v2014_v48, 4294967295  ;;  %v648_v63 = vsel %vm632_vm13, %v2020_v56, 4294967295  ;;  %v649_v20 = vsel %vm633_vm10, %v2026_v14, 4294967295  ;;  %v650_v16 = vsel %vm634_vm14, %v2032_v4, 4294967295 }
 0x22b   :  { %v651_v48 = vsel %vm635_vm1, %v2038_v1, 4294967295  ;;  %v652_v56 = vsel %vm636_vm2, %v2044_v26, 4294967295  ;;  %v653_v14 = vsel %vm637_vm15, %v2050_v55, 4294967295  ;;  %v654_v4 = vsel %vm638_vm0, %v2056_v50, 4294967295  ;;  %v876_v32 = vpop.f32.mrf.mxu3 }
 0x22c   :  { %v655_v1 = vsel %vm639_vm3, %v2062_v9, 4294967295  ;;  %v656_v26 = vsel %vm640_vm4, %v2068_v17, 4294967295  ;;  %v657_v55 = vsel %vm641_vm5, %v2074_v28, 4294967295  ;;  %v658_v50 = vsel %vm642_vm6, %v2080_v61, 4294967295 }
 0x22d   :  { %v659_v9 = vsel %vm643_vm7, %v2086_v51, 4294967295  ;;  %v660_v17 = vsel %vm644_vm8, %v2092_v42, 4294967295  ;;  %v661_v28 = vsel %vm645_vm9, %v2098_v3, 4294967295  ;;  %v662_v61 = vsel %vm646_vm11, %v2104_v33, 4294967295 }
 0x22e   :  { %vm663_vm12 = vcmp.lt.s32.totalorder %v2115_v0, %v2218_v36  ;;  %vm2966_vm13 = vcmask 523264   ;;  %vm997_vm6 = vcmp.gt.s32.totalorder %v2202_v27, %v2210_v39 }
 0x22f   :  { %v665_v51 = vsel %vm2966_vm13, %v647_v43, 2147483648  ;;  %vm2967_vm10 = vmmov %vm2966_vm13  ;;  %v664_v42 = vsel %vm663_vm12, %v2115_v0, 4294967295 }
 0x230   :  { %v666_v30 = vsel %vm2967_vm10, %v648_v63, 2147483648  ;;  %vm2968_vm14 = vmmov %vm2967_vm10 }
 0x231   :  { %v667_v57 = vsel %vm2968_vm14, %v649_v20, 2147483648  ;;  %vm2969_vm1 = vmmov %vm2967_vm10 }
 0x232   :  { %v668_v8 = vsel %vm2969_vm1, %v650_v16, 2147483648  ;;  %vm2970_vm2 = vmmov %vm2969_vm1 }
 0x233   :  { %v669_v3 = vsel %vm2970_vm2, %v651_v48, 2147483648  ;;  %vm2971_vm15 = vmmov %vm2969_vm1 }
 0x234   :  { %v672_v13 = vsel %vm2971_vm15, %v652_v56, 2147483648  ;;  %vm670_vm0 = vcmp.gt.s32.totalorder %v665_v51, %v669_v3  ;;  %vm2972_vm4 = vmmov %vm2969_vm1 }
 0x235   :  { %vm673_vm3 = vcmp.gt.s32.totalorder %v666_v30, %v672_v13  ;;  %v675_v33 = vsel %vm2972_vm4, %v653_v14, 2147483648  ;;  %vm2973_vm5 = vmmov %vm2969_vm1  ;;  %v671_v10 = vsel %vm670_vm0, %v665_v51, %v669_v3  ;;  %v898_v51 = vmax.f32 %v876_v32, 0.0 }
 0x236   :  { %v678_v49 = vsel %vm2973_vm5, %v654_v4, 2147483648  ;;  %v674_v25 = vsel %vm673_vm3, %v666_v30, %v672_v13  ;;  %vm676_vm7 = vcmp.gt.s32.totalorder %v667_v57, %v675_v33  ;;  %vm2974_vm9 = vmmov %vm2969_vm1  ;;  %v2357_v30 = vsel %vm997_vm6, %v2202_v27, %v2210_v39  ;;  %v2361_v13 = vld [vmem:[#allocation2 + $0x4] sm:$0xf] }
 0x237   :  { %vm679_vm8 = vcmp.gt.s32.totalorder %v668_v8, %v678_v49  ;;  %v677_v0 = vsel %vm676_vm7, %v667_v57, %v675_v33  ;;  %v681_v18 = vsel %vm2974_vm9, %v655_v1, 2147483648  ;;  %vm2975_vm11 = vmmov %vm2969_vm1  ;;  %v930_v3 = vshra.s32 %v898_v51, 7 }
 0x238   :  { %v680_v24 = vsel %vm679_vm8, %v668_v8, %v678_v49  ;;  %v684_v38 = vsel %vm2975_vm11, %v656_v26, 2147483648  ;;  %vm682_vm12 = vcmp.gt.s32.totalorder %v671_v10, %v681_v18  ;;  %vm2976_vm10 = vmmov %vm2969_vm1  ;;  %v879_v26 = vpop.f32.mrf.mxu3  ;;  %v2984_v32 = vsub.s32 127, %v1663_v5 }
 0x239   :  { %vm685_vm13 = vcmp.gt.s32.totalorder %v674_v25, %v684_v38  ;;  %v687_v6 = vsel %vm2976_vm10, %v657_v55, 2147483648  ;;  %vm2977_vm14 = vmmov %vm2969_vm1  ;;  %v683_v46 = vsel %vm682_vm12, %v671_v10, %v681_v18  ;;  %vm2982_vm12 = vcmask 519168  }
 0x23a   :  { %v690_v35 = vsel %vm2977_vm14, %v658_v50, 2147483648  ;;  %v686_v22 = vsel %vm685_vm13, %v674_v25, %v684_v38  ;;  %vm688_vm1 = vcmp.gt.s32.totalorder %v677_v0, %v687_v6  ;;  %vm2978_vm15 = vmmov %vm2972_vm4  ;;  %v720_v1 = vsel %vm2982_vm12, %v664_v42, 2147483648 }
 0x23b   :  { %vm691_vm2 = vcmp.gt.s32.totalorder %v680_v24, %v690_v35  ;;  %v689_v2 = vsel %vm688_vm1, %v677_v0, %v687_v6  ;;  %v693_v43 = vsel %vm2978_vm15, %v659_v9, 2147483648  ;;  %vm2979_vm0 = vmmov %vm2972_vm4  ;;  %v721_v50 = vrot.slane %v720_v1, 4 }
 0x23c   :  { %v692_v52 = vsel %vm691_vm2, %v680_v24, %v690_v35  ;;  %v696_v63 = vsel %vm2979_vm0, %v660_v17, 2147483648  ;;  %vm694_vm3 = vcmp.gt.s32.totalorder %v683_v46, %v693_v43  ;;  %vm2980_vm5 = vmmov %vm2979_vm0  ;;  %v944_v9 = vsub.s32 16777215, %v2226_v47 }
 0x23d   :  { %vm697_vm4 = vcmp.gt.s32.totalorder %v686_v22, %v696_v63  ;;  %v699_v20 = vsel %vm2980_vm5, %v661_v28, 2147483648  ;;  %vm2981_vm7 = vmmov %vm2979_vm0  ;;  %v695_v48 = vsel %vm694_vm3, %v683_v46, %v693_v43  ;;  %v897_v28 = vmax.f32 %v2254_v40, 0.0 }
 0x23e   :  { %v702_v16 = vsel %vm2981_vm7, %v662_v61, 2147483648  ;;  %v698_v56 = vsel %vm697_vm4, %v686_v22, %v696_v63  ;;  %vm700_vm8 = vcmp.gt.s32.totalorder %v689_v2, %v699_v20  ;;  %v899_v61 = vmax.f32 %v879_v26, 0.0  ;;  %vm2983_vm1 = vmmov %vm2979_vm0 }
 0x23f   :  { %vm703_vm9 = vcmp.gt.s32.totalorder %v692_v52, %v702_v16  ;;  %v701_v14 = vsel %vm700_vm8, %v689_v2, %v699_v20  ;;  %vm705_vm11 = vcmp.gt.s32.totalorder %v695_v48, %v698_v56  ;;  %vm722_vm14 = vcmp.gt.s32.totalorder %v720_v1, %v721_v50  ;;  %vm2985_vm0 = vmmov %vm2982_vm12 }
 0x240   :  { %v704_v4 = vsel %vm703_vm9, %v692_v52, %v702_v16  ;;  %v706_v55 = vsel %vm705_vm11, %v695_v48, %v698_v56  ;;  %v1002_v57 = vsel %vm2983_vm1, %v2214_v31, 2147483648  ;;  %v723_v8 = vsel %vm722_vm14, %v720_v1, %v721_v50  ;;  %v882_v46 = vpop.f32.mrf.mxu3  ;;  %vm2989_vm5 = vmmov %vm2983_vm1 }
 0x241   :  { %vm707_vm13 = vcmp.gt.s32.totalorder %v701_v14, %v704_v4  ;;  %v929_v47 = vshra.s32 %v897_v28, 7  ;;  %v724_v33 = vrot.slane %v723_v8, 2  ;;  %vm1000_vm2 = vcmp.gt.s32.totalorder %v2204_v11, %v2222_v37  ;;  %vm2990_vm8 = vmmov %vm2983_vm1 }
 0x242   :  { %v708_v17 = vsel %vm707_vm13, %v701_v14, %v704_v4  ;;  %v931_v49 = vshra.s32 %v899_v61, 7  ;;  %v2368_v27 = vor.u32 %v2224_v62, %v2984_v32  ;;  %v960_v39 = vshll.u32 %v944_v9, 7  ;;  %vm2992_vm11 = vmmov %vm2983_vm1 }
 0x243   :  { %vm709_vm10 = vcmp.gt.s32.totalorder %v706_v55, %v708_v17  ;;  %v945_v10 = vsub.s32 16777215, %v929_v47  ;;  %v946_v25 = vsub.s32 16777215, %v930_v3  ;;  %vm725_vm15 = vcmp.gt.s32.totalorder %v723_v8, %v724_v33  ;;  %vm2993_vm12 = vmmov %vm2983_vm1 }
 0x244   :  { %v710_v42 = vsel %vm709_vm10, %v706_v55, %v708_v17  ;;  %v947_v0 = vsub.s32 16777215, %v931_v49  ;;  %v1038_v24 = vsel %vm2985_vm0, %v2361_v13, 2147483648  ;;  %v726_v38 = vsel %vm725_vm15, %v723_v8, %v724_v33 }
 0x245   :  { %v711_v40 = vrot.slane %v710_v42, 4  ;;  %v961_v6 = vshll.u32 %v945_v10, 7  ;;  %v962_v35 = vshll.u32 %v946_v25, 7  ;;  %v727_v2 = vrot.slane %v726_v38, 1 }
 0x246   :  { %v963_v5 = vshll.u32 %v947_v0, 7  ;;  %v900_v52 = vmax.f32 %v882_v46, 0.0  ;;  %vm1003_vm3 = vcmp.gt.s32.totalorder %v2206_v34, %v1002_v57  ;;  %v2986_v62 = vsub.s32 127, %v1676_v19 }
 0x247   :  { %vm712_vm6 = vcmp.gt.s32.totalorder %v710_v42, %v711_v40  ;;  %v2987_v63 = vsub.s32 127, %v1679_v21  ;;  %v2988_v16 = vsub.s32 127, %v1666_v7  ;;  %v1005_v56 = vsel %vm2989_vm5, %v2368_v27, 2147483648 }
 0x248   :  { %v713_v18 = vsel %vm712_vm6, %v710_v42, %v711_v40  ;;  %v2375_v43 = vor.u32 %v960_v39, %v2986_v62  ;;  %v932_v14 = vshra.s32 %v900_v52, 7  ;;  %v1039_v4 = vrot.slane %v1038_v24, 4 }
 0x249   :  { %v714_v22 = vrot.slane %v713_v18, 2  ;;  %v2379_v20 = vor.u32 %v961_v6, %v2987_v63  ;;  %v2383_v48 = vor.u32 %v962_v35, %v2988_v16  ;;  %vm728_vm7 = vcmp.gt.s32.totalorder %v726_v38, %v727_v2 }
 0x24a   :  { %v2991_v26 = vsub.s32 127, %v1693_v44  ;;  %v1001_v7 = vsel %vm1000_vm2, %v2204_v11, %v2222_v37  ;;  %v1004_v50 = vsel %vm1003_vm3, %v2206_v34, %v1002_v57  ;;  %v628_v9 = vand.u32 127, %v2218_v36 }
 0x24b   :  { %vm715_vm4 = vcmp.gt.s32.totalorder %v713_v18, %v714_v22  ;;  %v1014_v19 = vsel %vm2990_vm8, %v2383_v48, 2147483648  ;;  %vm1006_vm9 = vcmp.gt.s32.totalorder %v2216_v54, %v1005_v56  ;;  %v1008_v17 = vsel %vm2992_vm11, %v2375_v43, 2147483648 }
 0x24c   :  { %v716_v1 = vsel %vm715_vm4, %v713_v18, %v714_v22  ;;  %v2391_v21 = vor.u32 %v963_v5, %v2991_v26  ;;  %v1011_v44 = vsel %vm2993_vm12, %v2379_v20, 2147483648  ;;  %v948_v28 = vsub.s32 16777215, %v932_v14  ;;  %vm2996_vm4 = vmmov %vm2983_vm1 }
 0x24d   :  { %v717_v55 = vrot.slane %v716_v1, 1  ;;  %v729_v51 = vsel %vm728_vm7, %v726_v38, %v727_v2  ;;  %vm1015_vm10 = vcmp.gt.s32.totalorder %v1004_v50, %v1014_v19  ;;  %vm1040_vm14 = vcmp.gt.s32.totalorder %v1038_v24, %v1039_v4 }
 0x24e   :  { %v1017_v11 = vsel %vm2983_vm1, %v2391_v21, 2147483648  ;;  %v964_v34 = vshll.u32 %v948_v28, 7  ;;  %v1041_v37 = vsel %vm1040_vm14, %v1038_v24, %v1039_v4  ;;  %vm1009_vm6 = vcmp.gt.s32.totalorder %v2357_v30, %v1008_v17 }
 0x24f   :  { %vm718_vm13 = vcmp.gt.s32.totalorder %v716_v1, %v717_v55  ;;  %vm1012_vm15 = vcmp.gt.s32.totalorder %v1001_v7, %v1011_v44  ;;  %v629_v36 = vsub.s32 127, %v628_v9  ;;  %v1016_v42 = vsel %vm1015_vm10, %v1004_v50, %v1014_v19 }
 0x250   :  { %v719_v61 = vsel %vm718_vm13, %v716_v1, %v717_v55  ;;  %v1007_v8 = vsel %vm1006_vm9, %v2216_v54, %v1005_v56  ;;  %v2994_v47 = vsub.s32 127, %v1735_v41  ;;  %vm2995_vm0 = vcmask 516096  }
 0x251   :  { %vm730_vm2 = vcmp.gt.s32.totalorder %v719_v61, %v729_v51  ;;  %vm1018_vm3 = vcmp.gt.s32.totalorder %v1007_v8, %v1017_v11  ;;  %v1042_v33 = vrot.slane %v1041_v37, 2  ;;  %v1013_v49 = vsel %vm1012_vm15, %v1001_v7, %v1011_v44  ;;  %vm2997_vm5 = vmmov %vm2995_vm0 }
 0x252   :  { %v731_v57 = vsel %vm730_vm2, %v719_v61, %v729_v51  ;;  %v2413_v3 = vor.u32 %v964_v34, %v2994_v47  ;;  %v1010_v32 = vsel %vm1009_vm6, %v2357_v30, %v1008_v17  ;;  %630 = vst.msk [vmem:[#allocation8 + $0x2] sm:$0x1] %vm2997_vm5, %v629_v36  ;;  %vm1023_vm7 = vcmp.gt.s32.totalorder %v1013_v49, %v1016_v42  ;;  %vm2998_vm9 = vmmov %vm2995_vm0 }
 0x253   :  { %732 = vst.msk [vmem:[#allocation2 + $0x3] sm:$0x1] %vm2995_vm0, %v731_v57  ;;  %v733_v40 = vand.u32 127, %v731_v57  ;;  %v1019_v54 = vsel %vm1018_vm3, %v1007_v8, %v1017_v11  ;;  %vm1043_vm12 = vcmp.gt.s32.totalorder %v1041_v37, %v1042_v33  ;;  %v1024_v25 = vsel %vm1023_vm7, %v1013_v49, %v1016_v42  ;;  %vm2999_vm15 = vmmov %vm2995_vm0 }
 0x254   :  { %v1020_v39 = vsel %vm2996_vm4, %v2413_v3, 2147483648  ;;  %v1044_v18 = vsel %vm1043_vm12, %v1041_v37, %v1042_v33 }
 0x255   :  { %v734_v10 = vsub.s32 127, %v733_v40  ;;  %vm1021_vm8 = vcmp.gt.s32.totalorder %v1010_v32, %v1020_v39  ;;  %v1045_v38 = vrot.slane %v1044_v18, 1 }
 0x256   :  { %v1022_v41 = vsel %vm1021_vm8, %v1010_v32, %v1020_v39 }
 0x257   :  { %735 = vst.msk [vmem:[#allocation8 + $0x3] sm:$0x1] %vm2998_vm9, %v734_v10  ;;  %vm1025_vm11 = vcmp.gt.s32.totalorder %v1019_v54, %v1022_v41  ;;  %vm1046_vm1 = vcmp.gt.s32.totalorder %v1044_v18, %v1045_v38 }
 0x258   :  { %v1026_v0 = vsel %vm1025_vm11, %v1019_v54, %v1022_v41  ;;  %v1047_v2 = vsel %vm1046_vm1, %v1044_v18, %v1045_v38 }
 0x259   :  { %vm1027_vm13 = vcmp.gt.s32.totalorder %v1024_v25, %v1026_v0 }
 0x25a   :  { %v1028_v24 = vsel %vm1027_vm13, %v1024_v25, %v1026_v0 }
 0x25b   :  { %v1029_v30 = vrot.slane %v1028_v24, 4 }
 0x25d   :  { %vm1030_vm10 = vcmp.gt.s32.totalorder %v1028_v24, %v1029_v30 }
 0x25e   :  { %v1031_v6 = vsel %vm1030_vm10, %v1028_v24, %v1029_v30 }
 0x25f   :  { %v1032_v35 = vrot.slane %v1031_v6, 2 }
 0x261   :  { %vm1033_vm14 = vcmp.gt.s32.totalorder %v1031_v6, %v1032_v35 }
 0x262   :  { %v1034_v46 = vsel %vm1033_vm14, %v1031_v6, %v1032_v35 }
 0x263   :  { %v1035_v22 = vrot.slane %v1034_v46, 1 }
 0x265   :  { %vm1036_vm2 = vcmp.gt.s32.totalorder %v1034_v46, %v1035_v22 }
 0x266   :  { %v1037_v5 = vsel %vm1036_vm2, %v1034_v46, %v1035_v22 }
 0x267   :  { %vm1048_vm6 = vcmp.gt.s32.totalorder %v1037_v5, %v1047_v2 }
 0x268   :  { %v2421_v52 = vsel %vm1048_vm6, %v1037_v5, %v1047_v2 }
 0x269   :  { %1050 = vst.msk [vmem:[#allocation2 + $0x4] sm:$0x1] %vm2999_vm15, %v2421_v52  ;;  %vm1055_vm0 = vcmp.lt.s32.totalorder %v1960_v29, %v2421_v52  ;;  %vm1056_vm3 = vcmp.lt.s32.totalorder %v2162_v12, %v2421_v52  ;;  %vm1057_vm4 = vcmp.lt.s32.totalorder %v2167_v58, %v2421_v52  ;;  %vm1058_vm5 = vcmp.lt.s32.totalorder %v2186_v59, %v2421_v52 }
 0x26a   :  { %vm1059_vm7 = vcmp.lt.s32.totalorder %v2148_v60, %v2421_v52  ;;  %vm1060_vm8 = vcmp.lt.s32.totalorder %v2154_v15, %v2421_v52  ;;  %vm1061_vm9 = vcmp.lt.s32.totalorder %v2173_v45, %v2421_v52  ;;  %vm1062_vm11 = vcmp.lt.s32.totalorder %v2194_v53, %v2421_v52 }
 0x26b   :  { %vm1063_vm12 = vcmp.lt.s32.totalorder %v2198_v23, %v2421_v52  ;;  %vm1064_vm13 = vcmp.lt.s32.totalorder %v2214_v31, %v2421_v52  ;;  %vm1065_vm10 = vcmp.lt.s32.totalorder %v2368_v27, %v2421_v52  ;;  %vm1066_vm14 = vcmp.lt.s32.totalorder %v2375_v43, %v2421_v52 }
 0x26c   :  { %vm1067_vm1 = vcmp.lt.s32.totalorder %v2379_v20, %v2421_v52  ;;  %vm1068_vm2 = vcmp.lt.s32.totalorder %v2383_v48, %v2421_v52  ;;  %vm1069_vm6 = vcmp.lt.s32.totalorder %v2391_v21, %v2421_v52  ;;  %vm1070_vm15 = vcmp.lt.s32.totalorder %v2413_v3, %v2421_v52 }
 0x26d   :  { %v2461_v62 = vsel %vm1055_vm0, %v1960_v29, 4294967295  ;;  %v2467_v63 = vsel %vm1056_vm3, %v2162_v12, 4294967295  ;;  %v2473_v16 = vsel %vm1057_vm4, %v2167_v58, 4294967295  ;;  %v2479_v56 = vsel %vm1058_vm5, %v2186_v59, 4294967295 }
 0x26e   :  { %v2485_v29 = vsel %vm1059_vm7, %v2148_v60, 4294967295  ;;  %v2491_v12 = vsel %vm1060_vm8, %v2154_v15, 4294967295  ;;  %v2497_v58 = vsel %vm1061_vm9, %v2173_v45, 4294967295  ;;  %v2503_v59 = vsel %vm1062_vm11, %v2194_v53, 4294967295 }
 0x26f   :  { %v2509_v60 = vsel %vm1063_vm12, %v2198_v23, 4294967295  ;;  %v2515_v15 = vsel %vm1064_vm13, %v2214_v31, 4294967295  ;;  %v2521_v45 = vsel %vm1065_vm10, %v2368_v27, 4294967295  ;;  %v2527_v53 = vsel %vm1066_vm14, %v2375_v43, 4294967295 }
 0x270   :  { %v2533_v23 = vsel %vm1067_vm1, %v2379_v20, 4294967295  ;;  %v2539_v31 = vsel %vm1068_vm2, %v2383_v48, 4294967295  ;;  %v2545_v27 = vsel %vm1069_vm6, %v2391_v21, 4294967295  ;;  %v2551_v43 = vsel %vm1070_vm15, %v2413_v3, 4294967295 }
 0x271   :  { %vm1087_vm0 = vcmp.lt.s32.totalorder %v2361_v13, %v2421_v52  ;;  %vm3000_vm3 = vcmask 523264   ;;  %v1051_v10 = vand.u32 127, %v2421_v52 }
 0x272   :  { %v1089_v20 = vsel %vm3000_vm3, %v2461_v62, 2147483648  ;;  %vm3001_vm4 = vmmov %vm3000_vm3  ;;  %v2562_v4 = vsel %vm1087_vm0, %v2361_v13, 4294967295 }
 0x273   :  { %v1090_v48 = vsel %vm3001_vm4, %v2467_v63, 2147483648  ;;  %vm3002_vm5 = vmmov %vm3000_vm3  ;;  %v1052_v41 = vsub.s32 127, %v1051_v10 }
 0x274   :  { %v1091_v14 = vsel %vm3002_vm5, %v2473_v16, 2147483648  ;;  %vm3003_vm7 = vmmov %vm3000_vm3 }
 0x275   :  { %v1092_v1 = vsel %vm3003_vm7, %v2479_v56, 2147483648  ;;  %vm3004_vm8 = vmmov %vm3000_vm3 }
 0x276   :  { %v1093_v19 = vsel %vm3004_vm8, %v2485_v29, 2147483648  ;;  %vm3005_vm9 = vmmov %vm3000_vm3 }
 0x277   :  { %v1096_v26 = vsel %vm3005_vm9, %v2491_v12, 2147483648  ;;  %vm1094_vm11 = vcmp.gt.s32.totalorder %v1089_v20, %v1093_v19  ;;  %vm3006_vm13 = vmmov %vm3000_vm3 }
 0x278   :  { %vm1097_vm12 = vcmp.gt.s32.totalorder %v1090_v48, %v1096_v26  ;;  %v1099_v21 = vsel %vm3006_vm13, %v2497_v58, 2147483648  ;;  %vm3007_vm10 = vmmov %vm3000_vm3  ;;  %v1095_v7 = vsel %vm1094_vm11, %v1089_v20, %v1093_v19 }
 0x279   :  { %v1102_v55 = vsel %vm3007_vm10, %v2503_v59, 2147483648  ;;  %v1098_v13 = vsel %vm1097_vm12, %v1090_v48, %v1096_v26  ;;  %vm1100_vm14 = vcmp.gt.s32.totalorder %v1091_v14, %v1099_v21  ;;  %vm3008_vm2 = vmmov %vm3000_vm3 }
 0x27a   :  { %vm1103_vm1 = vcmp.gt.s32.totalorder %v1092_v1, %v1102_v55  ;;  %v1101_v50 = vsel %vm1100_vm14, %v1091_v14, %v1099_v21  ;;  %v1105_v17 = vsel %vm3008_vm2, %v2509_v60, 2147483648  ;;  %vm3009_vm6 = vmmov %vm3008_vm2 }
 0x27b   :  { %v1104_v9 = vsel %vm1103_vm1, %v1092_v1, %v1102_v55  ;;  %v1108_v44 = vsel %vm3009_vm6, %v2515_v15, 2147483648  ;;  %vm1106_vm15 = vcmp.gt.s32.totalorder %v1095_v7, %v1105_v17  ;;  %vm3010_vm3 = vmmov %vm3008_vm2  ;;  %vm3016_vm6 = vcmask 519168  }
 0x27c   :  { %vm1109_vm0 = vcmp.gt.s32.totalorder %v1098_v13, %v1108_v44  ;;  %v1111_v28 = vsel %vm3010_vm3, %v2521_v45, 2147483648  ;;  %vm3011_vm4 = vmmov %vm3008_vm2  ;;  %v1107_v61 = vsel %vm1106_vm15, %v1095_v7, %v1105_v17  ;;  %v1144_v49 = vsel %vm3016_vm6, %v2562_v4, 2147483648 }
 0x27d   :  { %v1114_v51 = vsel %vm3011_vm4, %v2527_v53, 2147483648  ;;  %v1110_v11 = vsel %vm1109_vm0, %v1098_v13, %v1108_v44  ;;  %vm1112_vm5 = vcmp.gt.s32.totalorder %v1101_v50, %v1111_v28  ;;  %vm3012_vm8 = vmmov %vm3008_vm2  ;;  %v1145_v39 = vrot.slane %v1144_v49, 4 }
 0x27e   :  { %vm1115_vm7 = vcmp.gt.s32.totalorder %v1104_v9, %v1114_v51  ;;  %v1113_v34 = vsel %vm1112_vm5, %v1101_v50, %v1111_v28  ;;  %v1117_v36 = vsel %vm3012_vm8, %v2533_v23, 2147483648  ;;  %vm3013_vm9 = vmmov %vm3008_vm2  ;;  %vm3017_vm4 = vcmask 516096  }
 0x27f   :  { %v1116_v37 = vsel %vm1115_vm7, %v1104_v9, %v1114_v51  ;;  %v1120_v57 = vsel %vm3013_vm9, %v2539_v31, 2147483648  ;;  %vm1118_vm11 = vcmp.gt.s32.totalorder %v1107_v61, %v1117_v36  ;;  %vm3014_vm13 = vmmov %vm3008_vm2  ;;  %vm1146_vm3 = vcmp.gt.s32.totalorder %v1144_v49, %v1145_v39  ;;  %1054 = vst.msk [vmem:[#allocation8 + $0x4] sm:$0x1] %vm3017_vm4, %v1052_v41 }
 0x280   :  { %vm1121_vm12 = vcmp.gt.s32.totalorder %v1110_v11, %v1120_v57  ;;  %v1123_v42 = vsel %vm3014_vm13, %v2545_v27, 2147483648  ;;  %vm3015_vm10 = vmmov %vm3008_vm2  ;;  %v1119_v47 = vsel %vm1118_vm11, %v1107_v61, %v1117_v36  ;;  %v1147_v0 = vsel %vm1146_vm3, %v1144_v49, %v1145_v39 }
 0x281   :  { %v1126_v8 = vsel %vm3015_vm10, %v2551_v43, 2147483648  ;;  %v1122_v3 = vsel %vm1121_vm12, %v1110_v11, %v1120_v57  ;;  %vm1124_vm14 = vcmp.gt.s32.totalorder %v1113_v34, %v1123_v42  ;;  %v1148_v18 = vrot.slane %v1147_v0, 2  ;;  %vm3018_vm13 = vmmov %vm3017_vm4 }
 0x282   :  { %vm1127_vm1 = vcmp.gt.s32.totalorder %v1116_v37, %v1126_v8  ;;  %v1125_v40 = vsel %vm1124_vm14, %v1113_v34, %v1123_v42  ;;  %vm1129_vm2 = vcmp.gt.s32.totalorder %v1119_v47, %v1122_v3 }
 0x283   :  { %v1128_v33 = vsel %vm1127_vm1, %v1116_v37, %v1126_v8  ;;  %v1130_v32 = vsel %vm1129_vm2, %v1119_v47, %v1122_v3  ;;  %vm1149_vm7 = vcmp.gt.s32.totalorder %v1147_v0, %v1148_v18 }
 0x284   :  { %vm1131_vm15 = vcmp.gt.s32.totalorder %v1125_v40, %v1128_v33  ;;  %v1150_v38 = vsel %vm1149_vm7, %v1147_v0, %v1148_v18 }
 0x285   :  { %v1132_v54 = vsel %vm1131_vm15, %v1125_v40, %v1128_v33  ;;  %v1151_v35 = vrot.slane %v1150_v38, 1 }
 0x286   :  { %vm1133_vm0 = vcmp.gt.s32.totalorder %v1130_v32, %v1132_v54 }
 0x287   :  { %v1134_v25 = vsel %vm1133_vm0, %v1130_v32, %v1132_v54  ;;  %vm1152_vm9 = vcmp.gt.s32.totalorder %v1150_v38, %v1151_v35 }
 0x288   :  { %v1135_v24 = vrot.slane %v1134_v25, 4  ;;  %v1153_v5 = vsel %vm1152_vm9, %v1150_v38, %v1151_v35 }
 0x28a   :  { %vm1136_vm5 = vcmp.gt.s32.totalorder %v1134_v25, %v1135_v24 }
 0x28b   :  { %v1137_v30 = vsel %vm1136_vm5, %v1134_v25, %v1135_v24 }
 0x28c   :  { %v1138_v6 = vrot.slane %v1137_v30, 2 }
 0x28e   :  { %vm1139_vm8 = vcmp.gt.s32.totalorder %v1137_v30, %v1138_v6 }
 0x28f   :  { %v1140_v46 = vsel %vm1139_vm8, %v1137_v30, %v1138_v6 }
 0x290   :  { %v1141_v22 = vrot.slane %v1140_v46, 1 }
 0x292   :  { %vm1142_vm11 = vcmp.gt.s32.totalorder %v1140_v46, %v1141_v22 }
 0x293   :  { %v1143_v2 = vsel %vm1142_vm11, %v1140_v46, %v1141_v22 }
 0x294   :  { %vm1154_vm12 = vcmp.gt.s32.totalorder %v1143_v2, %v1153_v5 }
 0x295   :  { %v2594_v52 = vsel %vm1154_vm12, %v1143_v2, %v1153_v5 }
 0x296   :  { %1156 = vst.msk [vmem:[#allocation2 + $0x5] sm:$0x1] %vm3018_vm13, %v2594_v52  ;;  %vm1160_vm10 = vcmp.lt.s32.totalorder %v2461_v62, %v2594_v52  ;;  %vm1161_vm14 = vcmp.lt.s32.totalorder %v2467_v63, %v2594_v52  ;;  %vm1162_vm1 = vcmp.lt.s32.totalorder %v2473_v16, %v2594_v52  ;;  %vm1163_vm2 = vcmp.lt.s32.totalorder %v2479_v56, %v2594_v52 }
 0x297   :  { %vm1164_vm6 = vcmp.lt.s32.totalorder %v2485_v29, %v2594_v52  ;;  %vm1165_vm15 = vcmp.lt.s32.totalorder %v2491_v12, %v2594_v52  ;;  %vm1166_vm0 = vcmp.lt.s32.totalorder %v2497_v58, %v2594_v52  ;;  %vm1167_vm3 = vcmp.lt.s32.totalorder %v2503_v59, %v2594_v52 }
 0x298   :  { %vm1168_vm4 = vcmp.lt.s32.totalorder %v2509_v60, %v2594_v52  ;;  %vm1169_vm5 = vcmp.lt.s32.totalorder %v2515_v15, %v2594_v52  ;;  %vm1170_vm7 = vcmp.lt.s32.totalorder %v2521_v45, %v2594_v52  ;;  %vm1171_vm8 = vcmp.lt.s32.totalorder %v2527_v53, %v2594_v52 }
 0x299   :  { %vm1172_vm9 = vcmp.lt.s32.totalorder %v2533_v23, %v2594_v52  ;;  %vm1173_vm11 = vcmp.lt.s32.totalorder %v2539_v31, %v2594_v52  ;;  %vm1174_vm12 = vcmp.lt.s32.totalorder %v2545_v27, %v2594_v52  ;;  %vm1175_vm13 = vcmp.lt.s32.totalorder %v2551_v43, %v2594_v52 }
 0x29a   :  { %v2634_v20 = vsel %vm1160_vm10, %v2461_v62, 4294967295  ;;  %v2640_v48 = vsel %vm1161_vm14, %v2467_v63, 4294967295  ;;  %v2646_v14 = vsel %vm1162_vm1, %v2473_v16, 4294967295  ;;  %v2652_v1 = vsel %vm1163_vm2, %v2479_v56, 4294967295 }
 0x29b   :  { %v2658_v62 = vsel %vm1164_vm6, %v2485_v29, 4294967295  ;;  %v2664_v63 = vsel %vm1165_vm15, %v2491_v12, 4294967295  ;;  %v2670_v16 = vsel %vm1166_vm0, %v2497_v58, 4294967295  ;;  %v2676_v56 = vsel %vm1167_vm3, %v2503_v59, 4294967295 }
 0x29c   :  { %v2682_v29 = vsel %vm1168_vm4, %v2509_v60, 4294967295  ;;  %v2688_v12 = vsel %vm1169_vm5, %v2515_v15, 4294967295  ;;  %v2694_v58 = vsel %vm1170_vm7, %v2521_v45, 4294967295  ;;  %v2700_v59 = vsel %vm1171_vm8, %v2527_v53, 4294967295 }
 0x29d   :  { %v2706_v60 = vsel %vm1172_vm9, %v2533_v23, 4294967295  ;;  %v2712_v15 = vsel %vm1173_vm11, %v2539_v31, 4294967295  ;;  %v2718_v45 = vsel %vm1174_vm12, %v2545_v27, 4294967295  ;;  %v2724_v53 = vsel %vm1175_vm13, %v2551_v43, 4294967295 }
 0x29e   :  { %vm1192_vm10 = vcmp.lt.s32.totalorder %v2562_v4, %v2594_v52  ;;  %vm3019_vm14 = vcmask 523264   ;;  %v1157_v10 = vand.u32 127, %v2594_v52 }
 0x29f   :  { %v1194_v23 = vsel %vm3019_vm14, %v2634_v20, 2147483648  ;;  %vm3020_vm1 = vmmov %vm3019_vm14  ;;  %v2735_v27 = vsel %vm1192_vm10, %v2562_v4, 4294967295 }
 0x2a0   :  { %v1195_v31 = vsel %vm3020_vm1, %v2640_v48, 2147483648  ;;  %vm3021_vm2 = vmmov %vm3020_vm1  ;;  %v1158_v41 = vsub.s32 127, %v1157_v10 }
 0x2a1   :  { %v1196_v19 = vsel %vm3021_vm2, %v2646_v14, 2147483648  ;;  %vm3022_vm6 = vmmov %vm3020_vm1 }
 0x2a2   :  { %v1197_v26 = vsel %vm3022_vm6, %v2652_v1, 2147483648  ;;  %vm3023_vm15 = vmmov %vm3020_vm1 }
 0x2a3   :  { %v1198_v43 = vsel %vm3023_vm15, %v2658_v62, 2147483648  ;;  %vm3024_vm0 = vmmov %vm3020_vm1 }
 0x2a4   :  { %v1201_v21 = vsel %vm3024_vm0, %v2664_v63, 2147483648  ;;  %vm1199_vm3 = vcmp.gt.s32.totalorder %v1194_v23, %v1198_v43  ;;  %vm3025_vm5 = vmmov %vm3024_vm0  ;;  %v1225_v57 = vsel %vm3024_vm0, %v2712_v15, 2147483648 }
 0x2a5   :  { %vm1202_vm4 = vcmp.gt.s32.totalorder %v1195_v31, %v1201_v21  ;;  %v1204_v55 = vsel %vm3025_vm5, %v2670_v16, 2147483648  ;;  %vm3026_vm7 = vmmov %vm3024_vm0  ;;  %v1200_v13 = vsel %vm1199_vm3, %v1194_v23, %v1198_v43 }
 0x2a6   :  { %v1207_v7 = vsel %vm3026_vm7, %v2676_v56, 2147483648  ;;  %v1203_v4 = vsel %vm1202_vm4, %v1195_v31, %v1201_v21  ;;  %vm1205_vm8 = vcmp.gt.s32.totalorder %v1196_v19, %v1204_v55  ;;  %vm3027_vm11 = vmmov %vm3024_vm0 }
 0x2a7   :  { %vm1208_vm9 = vcmp.gt.s32.totalorder %v1197_v26, %v1207_v7  ;;  %v1206_v50 = vsel %vm1205_vm8, %v1196_v19, %v1204_v55  ;;  %v1210_v17 = vsel %vm3027_vm11, %v2682_v29, 2147483648  ;;  %vm3028_vm12 = vmmov %vm3024_vm0 }
 0x2a8   :  { %v1209_v9 = vsel %vm1208_vm9, %v1197_v26, %v1207_v7  ;;  %v1213_v44 = vsel %vm3028_vm12, %v2688_v12, 2147483648  ;;  %vm1211_vm13 = vcmp.gt.s32.totalorder %v1200_v13, %v1210_v17  ;;  %vm3029_vm14 = vmmov %vm3024_vm0  ;;  %vm3034_vm12 = vcmask 519168  }
 0x2a9   :  { %vm1214_vm10 = vcmp.gt.s32.totalorder %v1203_v4, %v1213_v44  ;;  %v1216_v28 = vsel %vm3029_vm14, %v2694_v58, 2147483648  ;;  %vm3030_vm1 = vmmov %vm3024_vm0  ;;  %v1212_v61 = vsel %vm1211_vm13, %v1200_v13, %v1210_v17  ;;  %v1249_v49 = vsel %vm3034_vm12, %v2735_v27, 2147483648 }
 0x2aa   :  { %v1219_v51 = vsel %vm3030_vm1, %v2700_v59, 2147483648  ;;  %v1215_v11 = vsel %vm1214_vm10, %v1203_v4, %v1213_v44  ;;  %vm1217_vm2 = vcmp.gt.s32.totalorder %v1206_v50, %v1216_v28  ;;  %vm3031_vm15 = vmmov %vm3024_vm0  ;;  %v1250_v39 = vrot.slane %v1249_v49, 4 }
 0x2ab   :  { %vm1220_vm6 = vcmp.gt.s32.totalorder %v1209_v9, %v1219_v51  ;;  %v1218_v34 = vsel %vm1217_vm2, %v1206_v50, %v1216_v28  ;;  %v1222_v36 = vsel %vm3031_vm15, %v2706_v60, 2147483648  ;;  %vm1226_vm4 = vcmp.gt.s32.totalorder %v1215_v11, %v1225_v57  ;;  %vm3032_vm5 = vmmov %vm3024_vm0 }
 0x2ac   :  { %v1221_v37 = vsel %vm1220_vm6, %v1209_v9, %v1219_v51  ;;  %vm1223_vm3 = vcmp.gt.s32.totalorder %v1212_v61, %v1222_v36  ;;  %v1228_v42 = vsel %vm3032_vm5, %v2718_v45, 2147483648  ;;  %vm3033_vm7 = vmmov %vm3024_vm0  ;;  %v1227_v3 = vsel %vm1226_vm4, %v1215_v11, %v1225_v57 }
 0x2ad   :  { %v1231_v8 = vsel %vm3033_vm7, %v2724_v53, 2147483648  ;;  %v1224_v47 = vsel %vm1223_vm3, %v1212_v61, %v1222_v36  ;;  %vm1229_vm8 = vcmp.gt.s32.totalorder %v1218_v34, %v1228_v42  ;;  %vm1251_vm14 = vcmp.gt.s32.totalorder %v1249_v49, %v1250_v39 }
 0x2ae   :  { %vm1232_vm9 = vcmp.gt.s32.totalorder %v1221_v37, %v1231_v8  ;;  %v1230_v40 = vsel %vm1229_vm8, %v1218_v34, %v1228_v42  ;;  %vm1234_vm11 = vcmp.gt.s32.totalorder %v1224_v47, %v1227_v3  ;;  %v1252_v0 = vsel %vm1251_vm14, %v1249_v49, %v1250_v39 }
 0x2af   :  { %v1233_v33 = vsel %vm1232_vm9, %v1221_v37, %v1231_v8  ;;  %v1235_v32 = vsel %vm1234_vm11, %v1224_v47, %v1227_v3  ;;  %v1253_v18 = vrot.slane %v1252_v0, 2  ;;  %vm3035_vm1 = vcmask 516096  }
 0x2b0   :  { %vm1236_vm13 = vcmp.gt.s32.totalorder %v1230_v40, %v1233_v33  ;;  %1159 = vst.msk [vmem:[#allocation8 + $0x5] sm:$0x1] %vm3035_vm1, %v1158_v41  ;;  %vm3036_vm5 = vmmov %vm3035_vm1 }
 0x2b1   :  { %v1237_v54 = vsel %vm1236_vm13, %v1230_v40, %v1233_v33  ;;  %vm1254_vm6 = vcmp.gt.s32.totalorder %v1252_v0, %v1253_v18 }
 0x2b2   :  { %vm1238_vm10 = vcmp.gt.s32.totalorder %v1235_v32, %v1237_v54  ;;  %v1255_v38 = vsel %vm1254_vm6, %v1252_v0, %v1253_v18 }
 0x2b3   :  { %v1239_v25 = vsel %vm1238_vm10, %v1235_v32, %v1237_v54  ;;  %v1256_v35 = vrot.slane %v1255_v38, 1 }
 0x2b4   :  { %v1240_v24 = vrot.slane %v1239_v25, 4 }
 0x2b5   :  { %vm1257_vm0 = vcmp.gt.s32.totalorder %v1255_v38, %v1256_v35 }
 0x2b6   :  { %vm1241_vm2 = vcmp.gt.s32.totalorder %v1239_v25, %v1240_v24  ;;  %v1258_v5 = vsel %vm1257_vm0, %v1255_v38, %v1256_v35 }
 0x2b7   :  { %v1242_v30 = vsel %vm1241_vm2, %v1239_v25, %v1240_v24 }
 0x2b8   :  { %v1243_v6 = vrot.slane %v1242_v30, 2 }
 0x2ba   :  { %vm1244_vm15 = vcmp.gt.s32.totalorder %v1242_v30, %v1243_v6 }
 0x2bb   :  { %v1245_v46 = vsel %vm1244_vm15, %v1242_v30, %v1243_v6 }
 0x2bc   :  { %v1246_v22 = vrot.slane %v1245_v46, 1 }
 0x2be   :  { %vm1247_vm3 = vcmp.gt.s32.totalorder %v1245_v46, %v1246_v22 }
 0x2bf   :  { %v1248_v2 = vsel %vm1247_vm3, %v1245_v46, %v1246_v22 }
 0x2c0   :  { %vm1259_vm4 = vcmp.gt.s32.totalorder %v1248_v2, %v1258_v5 }
 0x2c1   :  { %v2767_v52 = vsel %vm1259_vm4, %v1248_v2, %v1258_v5 }
 0x2c2   :  { %1261 = vst.msk [vmem:[#allocation2 + $0x6] sm:$0x1] %vm3036_vm5, %v2767_v52  ;;  %vm1265_vm7 = vcmp.lt.s32.totalorder %v2634_v20, %v2767_v52  ;;  %vm1266_vm8 = vcmp.lt.s32.totalorder %v2640_v48, %v2767_v52  ;;  %vm1267_vm9 = vcmp.lt.s32.totalorder %v2646_v14, %v2767_v52  ;;  %vm1268_vm11 = vcmp.lt.s32.totalorder %v2652_v1, %v2767_v52 }
 0x2c3   :  { %vm1269_vm12 = vcmp.lt.s32.totalorder %v2658_v62, %v2767_v52  ;;  %vm1270_vm13 = vcmp.lt.s32.totalorder %v2664_v63, %v2767_v52  ;;  %vm1271_vm10 = vcmp.lt.s32.totalorder %v2670_v16, %v2767_v52  ;;  %vm1272_vm14 = vcmp.lt.s32.totalorder %v2676_v56, %v2767_v52 }
 0x2c4   :  { %vm1273_vm1 = vcmp.lt.s32.totalorder %v2682_v29, %v2767_v52  ;;  %vm1274_vm2 = vcmp.lt.s32.totalorder %v2688_v12, %v2767_v52  ;;  %vm1275_vm6 = vcmp.lt.s32.totalorder %v2694_v58, %v2767_v52  ;;  %vm1276_vm15 = vcmp.lt.s32.totalorder %v2700_v59, %v2767_v52 }
 0x2c5   :  { %vm1277_vm0 = vcmp.lt.s32.totalorder %v2706_v60, %v2767_v52  ;;  %vm1278_vm3 = vcmp.lt.s32.totalorder %v2712_v15, %v2767_v52  ;;  %vm1279_vm4 = vcmp.lt.s32.totalorder %v2718_v45, %v2767_v52  ;;  %vm1280_vm5 = vcmp.lt.s32.totalorder %v2724_v53, %v2767_v52 }
 0x2c6   :  { %v1281_v23 = vsel %vm1265_vm7, %v2634_v20, 4294967295  ;;  %v1282_v31 = vsel %vm1266_vm8, %v2640_v48, 4294967295  ;;  %v1283_v19 = vsel %vm1267_vm9, %v2646_v14, 4294967295  ;;  %v1284_v26 = vsel %vm1268_vm11, %v2652_v1, 4294967295 }
 0x2c7   :  { %v1285_v20 = vsel %vm1269_vm12, %v2658_v62, 4294967295  ;;  %v1286_v48 = vsel %vm1270_vm13, %v2664_v63, 4294967295  ;;  %v1287_v14 = vsel %vm1271_vm10, %v2670_v16, 4294967295  ;;  %v1288_v1 = vsel %vm1272_vm14, %v2676_v56, 4294967295 }
 0x2c8   :  { %v1289_v62 = vsel %vm1273_vm1, %v2682_v29, 4294967295  ;;  %v1290_v63 = vsel %vm1274_vm2, %v2688_v12, 4294967295  ;;  %v1291_v16 = vsel %vm1275_vm6, %v2694_v58, 4294967295  ;;  %v1292_v56 = vsel %vm1276_vm15, %v2700_v59, 4294967295 }
 0x2c9   :  { %v1293_v29 = vsel %vm1277_vm0, %v2706_v60, 4294967295  ;;  %v1294_v12 = vsel %vm1278_vm3, %v2712_v15, 4294967295  ;;  %v1295_v58 = vsel %vm1279_vm4, %v2718_v45, 4294967295  ;;  %v1296_v59 = vsel %vm1280_vm5, %v2724_v53, 4294967295 }
 0x2ca   :  { %vm1297_vm7 = vcmp.lt.s32.totalorder %v2735_v27, %v2767_v52  ;;  %vm3037_vm8 = vcmask 523264   ;;  %v1262_v10 = vand.u32 127, %v2767_v52 }
 0x2cb   :  { %v1299_v60 = vsel %vm3037_vm8, %v1281_v23, 2147483648  ;;  %vm3038_vm9 = vmmov %vm3037_vm8  ;;  %v1298_v15 = vsel %vm1297_vm7, %v2735_v27, 4294967295 }
 0x2cc   :  { %v1300_v43 = vsel %vm3038_vm9, %v1282_v31, 2147483648  ;;  %vm3039_vm11 = vmmov %vm3037_vm8  ;;  %v1263_v41 = vsub.s32 127, %v1262_v10 }
 0x2cd   :  { %v1301_v21 = vsel %vm3039_vm11, %v1283_v19, 2147483648  ;;  %vm3040_vm12 = vmmov %vm3037_vm8 }
 0x2ce   :  { %v1302_v55 = vsel %vm3040_vm12, %v1284_v26, 2147483648  ;;  %vm3041_vm13 = vmmov %vm3037_vm8 }
 0x2cf   :  { %v1303_v45 = vsel %vm3041_vm13, %v1285_v20, 2147483648  ;;  %vm3042_vm10 = vmmov %vm3037_vm8 }
 0x2d0   :  { %v1306_v7 = vsel %vm3042_vm10, %v1286_v48, 2147483648  ;;  %vm1304_vm14 = vcmp.gt.s32.totalorder %v1299_v60, %v1303_v45  ;;  %vm3043_vm2 = vmmov %vm3037_vm8 }
 0x2d1   :  { %vm1307_vm1 = vcmp.gt.s32.totalorder %v1300_v43, %v1306_v7  ;;  %v1309_v53 = vsel %vm3043_vm2, %v1287_v14, 2147483648  ;;  %vm3044_vm6 = vmmov %vm3043_vm2  ;;  %v1305_v4 = vsel %vm1304_vm14, %v1299_v60, %v1303_v45  ;;  %v1333_v42 = vsel %vm3043_vm2, %v1295_v58, 2147483648 }
 0x2d2   :  { %v1312_v13 = vsel %vm3044_vm6, %v1288_v1, 2147483648  ;;  %v1308_v50 = vsel %vm1307_vm1, %v1300_v43, %v1306_v7  ;;  %vm1310_vm15 = vcmp.gt.s32.totalorder %v1301_v21, %v1309_v53  ;;  %vm3045_vm3 = vmmov %vm3043_vm2 }
 0x2d3   :  { %vm1313_vm0 = vcmp.gt.s32.totalorder %v1302_v55, %v1312_v13  ;;  %v1311_v9 = vsel %vm1310_vm15, %v1301_v21, %v1309_v53  ;;  %v1315_v27 = vsel %vm3045_vm3, %v1289_v62, 2147483648  ;;  %vm3046_vm4 = vmmov %vm3043_vm2 }
 0x2d4   :  { %v1314_v17 = vsel %vm1313_vm0, %v1302_v55, %v1312_v13  ;;  %v1318_v44 = vsel %vm3046_vm4, %v1290_v63, 2147483648  ;;  %vm1316_vm5 = vcmp.gt.s32.totalorder %v1305_v4, %v1315_v27  ;;  %vm3047_vm8 = vmmov %vm3043_vm2  ;;  %vm3052_vm4 = vcmask 519168  }
 0x2d5   :  { %vm1319_vm7 = vcmp.gt.s32.totalorder %v1308_v50, %v1318_v44  ;;  %v1321_v28 = vsel %vm3047_vm8, %v1291_v16, 2147483648  ;;  %vm3048_vm9 = vmmov %vm3043_vm2  ;;  %v1317_v61 = vsel %vm1316_vm5, %v1305_v4, %v1315_v27  ;;  %v1354_v49 = vsel %vm3052_vm4, %v1298_v15, 2147483648 }
 0x2d6   :  { %v1324_v51 = vsel %vm3048_vm9, %v1292_v56, 2147483648  ;;  %v1320_v11 = vsel %vm1319_vm7, %v1308_v50, %v1318_v44  ;;  %vm1322_vm11 = vcmp.gt.s32.totalorder %v1311_v9, %v1321_v28  ;;  %vm3049_vm13 = vmmov %vm3043_vm2  ;;  %v1355_v39 = vrot.slane %v1354_v49, 4 }
 0x2d7   :  { %vm1325_vm12 = vcmp.gt.s32.totalorder %v1314_v17, %v1324_v51  ;;  %v1323_v34 = vsel %vm1322_vm11, %v1311_v9, %v1321_v28  ;;  %v1327_v36 = vsel %vm3049_vm13, %v1293_v29, 2147483648  ;;  %vm3050_vm10 = vmmov %vm3043_vm2  ;;  %vm3053_vm9 = vcmask 516096  }
 0x2d8   :  { %v1326_v37 = vsel %vm1325_vm12, %v1314_v17, %v1324_v51  ;;  %v1330_v57 = vsel %vm3050_vm10, %v1294_v12, 2147483648  ;;  %vm1328_vm14 = vcmp.gt.s32.totalorder %v1317_v61, %v1327_v36  ;;  %vm3051_vm6 = vmmov %vm3043_vm2  ;;  %vm1334_vm15 = vcmp.gt.s32.totalorder %v1323_v34, %v1333_v42  ;;  %1264 = vst.msk [vmem:[#allocation8 + $0x6] sm:$0x1] %vm3053_vm9, %v1263_v41 }
 0x2d9   :  { %vm1331_vm1 = vcmp.gt.s32.totalorder %v1320_v11, %v1330_v57  ;;  %v1336_v8 = vsel %vm3051_vm6, %v1296_v59, 2147483648  ;;  %v1329_v47 = vsel %vm1328_vm14, %v1317_v61, %v1327_v36  ;;  %v1335_v40 = vsel %vm1334_vm15, %v1323_v34, %v1333_v42  ;;  %vm3054_vm2 = vmmov %vm3053_vm9 }
 0x2da   :  { %v1332_v3 = vsel %vm1331_vm1, %v1320_v11, %v1330_v57  ;;  %vm1337_vm0 = vcmp.gt.s32.totalorder %v1326_v37, %v1336_v8  ;;  %vm1356_vm8 = vcmp.gt.s32.totalorder %v1354_v49, %v1355_v39  ;;  %vm3055_vm6 = vmmov %vm3054_vm2 }
 0x2db   :  { %v1338_v33 = vsel %vm1337_vm0, %v1326_v37, %v1336_v8  ;;  %vm1339_vm3 = vcmp.gt.s32.totalorder %v1329_v47, %v1332_v3  ;;  %v1357_v0 = vsel %vm1356_vm8, %v1354_v49, %v1355_v39 }
 0x2dc   :  { %v1340_v32 = vsel %vm1339_vm3, %v1329_v47, %v1332_v3  ;;  %vm1341_vm5 = vcmp.gt.s32.totalorder %v1335_v40, %v1338_v33  ;;  %v1358_v18 = vrot.slane %v1357_v0, 2 }
 0x2dd   :  { %v1342_v54 = vsel %vm1341_vm5, %v1335_v40, %v1338_v33 }
 0x2de   :  { %vm1343_vm7 = vcmp.gt.s32.totalorder %v1340_v32, %v1342_v54  ;;  %vm1359_vm12 = vcmp.gt.s32.totalorder %v1357_v0, %v1358_v18 }
 0x2df   :  { %v1344_v25 = vsel %vm1343_vm7, %v1340_v32, %v1342_v54  ;;  %v1360_v38 = vsel %vm1359_vm12, %v1357_v0, %v1358_v18 }
 0x2e0   :  { %v1345_v24 = vrot.slane %v1344_v25, 4  ;;  %v1361_v35 = vrot.slane %v1360_v38, 1 }
 0x2e2   :  { %vm1346_vm11 = vcmp.gt.s32.totalorder %v1344_v25, %v1345_v24  ;;  %vm1362_vm10 = vcmp.gt.s32.totalorder %v1360_v38, %v1361_v35 }
 0x2e3   :  { %v1347_v30 = vsel %vm1346_vm11, %v1344_v25, %v1345_v24  ;;  %v1363_v5 = vsel %vm1362_vm10, %v1360_v38, %v1361_v35 }
 0x2e4   :  { %v1348_v6 = vrot.slane %v1347_v30, 2 }
 0x2e6   :  { %vm1349_vm13 = vcmp.gt.s32.totalorder %v1347_v30, %v1348_v6 }
 0x2e7   :  { %v1350_v46 = vsel %vm1349_vm13, %v1347_v30, %v1348_v6 }
 0x2e8   :  { %v1351_v22 = vrot.slane %v1350_v46, 1 }
 0x2ea   :  { %vm1352_vm14 = vcmp.gt.s32.totalorder %v1350_v46, %v1351_v22 }
 0x2eb   :  { %v1353_v2 = vsel %vm1352_vm14, %v1350_v46, %v1351_v22 }
 0x2ec   :  { %vm1364_vm1 = vcmp.gt.s32.totalorder %v1353_v2, %v1363_v5 }
 0x2ed   :  { %v1365_v52 = vsel %vm1364_vm1, %v1353_v2, %v1363_v5 }
 0x2ee   :  { %1366 = vst.msk [vmem:[#allocation2 + $0x7] sm:$0x1] %vm3054_vm2, %v1365_v52  ;;  %v1367_v23 = vand.u32 127, %v1365_v52 }
 0x2f0   :  { %v1368_v31 = vsub.s32 127, %v1367_v23 }
 0x2f2   :  { %1369 = vst.msk [vmem:[#allocation8 + $0x7] sm:$0x1] %vm3055_vm6, %v1368_v31 }
 0x2f3   :  { %1382 = dma.vmem_to_hbm [thread:$0]  %s1375_s1, 128, %s1377_s23, [#allocation5], %s1517_s24, %s1517_s24, %s1518_s25  }
 0x2f4   :  { %1509 = dma.done.wait [#allocation5], 128  }
 0x2f5   :  { %1510 = vsyncadd [#allocation5], 4294967168 }
 0x2f6   :  { %1387 = vsyncpa [#allocation4], 1 }
 0x2f7   :  { %1388 = vsyncpa [#allocation7], 1 }
 0x2f8   :  { %1389 = vsyncpa [#allocation5], 1 }

</bundles_post_ra>
